<compile_context>
chip_gen: v7x
topology: tpu7x:2x2x1
jax: 0.10.0
libtpu: 0.0.40
codegen_flags: <defaults>
</compile_context>

<pallas_src>
import functools
import math

import jax
import jax.numpy as jnp
from jax import lax
from jax.experimental import pallas as pl
from jax.experimental.pallas import tpu as pltpu


CONFIG = dict(
    vocab_size=256,
    hidden_size=32,
    intermediate_size=64,
    num_hidden_layers=2,
    num_attention_heads=4,
    num_key_value_heads=2,
    head_dim=8,
    rms_norm_eps=1e-6,
    rope_theta=10000.0,
)

_NEG_INF = -1e30  # f32-safe mask value (would overflow bf16)


def _default_vmem_limit():
    # v5e/v6e have 128 MiB of VMEM per core, v7x has 64 MiB.  Leave headroom.
    try:
        cap = int(pltpu.get_tpu_info().vmem_capacity_bytes)
        return int(min(cap - (16 << 20), 100 << 20))
    except Exception:
        return 48 << 20


_VMEM_LIMIT = _default_vmem_limit()


def _tile(dim, target):
    """Use `target` as a tile if it evenly divides `dim`, else the full dim.

    Real Gemma dims (256-/512-aligned) get proper tiles; the toy config falls
    back to full-extent blocks (which always satisfy the (8,128) rule).
    """
    return target if (dim >= target and dim % target == 0) else dim


# ----------------------------- Pallas kernels ------------------------------

def _make_linear_kernel(has_norm, has_res, eps):
    """y = [rmsnorm(x)*(1+nw)] @ W (+ residual), full-K contraction, no scratch."""

    def kernel(*refs):
        it = iter(refs)
        x_ref = next(it)
        nw_ref = next(it) if has_norm else None
        w_ref = next(it)
        r_ref = next(it) if has_res else None
        o_ref = next(it)

        x = x_ref[...]
        if has_norm:
            xf = x.astype(jnp.float32)
            var = jnp.mean(xf * xf, axis=-1, keepdims=True)
            xf = xf * lax.rsqrt(var + eps) * (1.0 + nw_ref[...].astype(jnp.float32))
            x = xf.astype(w_ref.dtype)                 # back to bf16 for the MXU
        acc = jnp.dot(x, w_ref[...], preferred_element_type=jnp.float32)
        if has_res:
            acc = acc + r_ref[...].astype(jnp.float32)
        o_ref[...] = acc.astype(o_ref.dtype)

    return kernel


def _mlp_kernel(x_ref, nw_ref, wg_ref, wu_ref, wd_ref, o_ref, xn_ref, acc_ref, *, eps):
    # GeGLU MLP with the post-attention RMSNorm fused in.  Grid axis 1 tiles
    # the intermediate dim ("arbitrary"):
    #   out = x + sum_j gelu_tanh(norm(x) @ Wg_j) * (norm(x) @ Wu_j) @ Wd_j
    j = pl.program_id(1)

    @pl.when(j == 0)
    def _():
        xf = x_ref[...].astype(jnp.float32)
        var = jnp.mean(xf * xf, axis=-1, keepdims=True)
        xn = xf * lax.rsqrt(var + eps) * (1.0 + nw_ref[...].astype(jnp.float32))
        xn_ref[...] = xn.astype(xn_ref.dtype)          # normed x, computed once
        acc_ref[...] = jnp.zeros(acc_ref.shape, jnp.float32)

    xn = xn_ref[...]
    gate = jnp.dot(xn, wg_ref[...], preferred_element_type=jnp.float32)
    up = jnp.dot(xn, wu_ref[...], preferred_element_type=jnp.float32)
    c = 0.7978845608028654  # sqrt(2/pi) — torch "gelu_pytorch_tanh", f32 math
    act = 0.5 * gate * (1.0 + jnp.tanh(c * (gate + 0.044715 * gate * gate * gate)))
    h = (act * up).astype(wd_ref.dtype)                # bf16 for the MXU
    acc_ref[...] += jnp.dot(h, wd_ref[...], preferred_element_type=jnp.float32)

    @pl.when(j == pl.num_programs(1) - 1)
    def _():
        o_ref[...] = (acc_ref[...] +
                      x_ref[...].astype(jnp.float32)).astype(o_ref.dtype)


def _flash_attn_kernel(q_ref, k_ref, v_ref, bias_ref, o_ref, m_ref, l_ref, acc_ref):
    # One (batch, kv-head-group, q-block) tile; KV blocks on the last
    # ("arbitrary") grid axis with online softmax.  All n_rep query heads of
    # this KV head share one K/V DMA.  Causal mask built from iota; padding
    # mask arrives as an additive f32 bias of shape (1, tkv).  q is already
    # pre-scaled (scale folded into the RoPE tables).
    qi = pl.program_id(2)
    ki = pl.program_id(3)
    n_rep, tq, D = q_ref.shape
    tkv = k_ref.shape[0]

    @pl.when(ki == 0)
    def _():
        m_ref[...] = jnp.full(m_ref.shape, _NEG_INF, jnp.float32)
        l_ref[...] = jnp.zeros(l_ref.shape, jnp.float32)
        acc_ref[...] = jnp.zeros(acc_ref.shape, jnp.float32)

    # Causal block skipping: fully-masked upper-triangular KV blocks do nothing.
    @pl.when(ki * tkv <= qi * tq + (tq - 1))
    def _():
        k = k_ref[...]
        v = v_ref[...]
        bias = bias_ref[...]                                        # (1, tkv) f32
        q_pos = qi * tq + lax.broadcasted_iota(jnp.int32, (tq, tkv), 0)
        k_pos = ki * tkv + lax.broadcasted_iota(jnp.int32, (tq, tkv), 1)
        causal = q_pos >= k_pos
        for h in range(n_rep):                                      # static unroll
            s = lax.dot_general(q_ref[h], k, (((1,), (1,)), ((), ())),
                                preferred_element_type=jnp.float32)  # (tq, tkv)
            s = jnp.where(causal, s + bias, _NEG_INF)
            m_prev = m_ref[h]
            m_new = jnp.maximum(m_prev, jnp.max(s, axis=-1, keepdims=True))
            alpha = jnp.exp(m_prev - m_new)
            p = jnp.exp(s - m_new)
            p = jnp.where(s > 0.5 * _NEG_INF, p, 0.0)   # fully-masked rows stay 0
            l_ref[h] = alpha * l_ref[h] + jnp.sum(p, axis=-1, keepdims=True)
            acc_ref[h] = alpha * acc_ref[h] + jnp.dot(
                p.astype(v.dtype), v, preferred_element_type=jnp.float32)
            m_ref[h] = m_new

    @pl.when(ki == pl.num_programs(3) - 1)
    def _():
        l = l_ref[...]
        l = jnp.where(l == 0.0, 1.0, l)                 # padded rows -> zeros
        o_ref[...] = (acc_ref[...] *
                      pl.reciprocal(l, approx=True)).astype(o_ref.dtype)


# ----------------------------- kernel wrappers ------------------------------

def linear(x, w, *, residual=None, norm_weight=None, eps=None, out_dtype=None,
           tm=1024, tn=256):
    """y = [rmsnorm(x)] @ w (+ residual).  w stored pre-transposed as [in, out].

    Full-K contraction (no K-tiling): with the N axis innermost the x block is
    fetched once per token block and each weight tile streams from HBM
    ~ceil(M/tm) times (once for the toy / decode shapes)."""
    M, K = x.shape
    N = w.shape[1]
    tm, tn = _tile(M, tm), _tile(N, tn)
    out_dtype = out_dtype or x.dtype
    grid = (M // tm, N // tn)

    in_specs = [pl.BlockSpec((tm, K), lambda i, j: (i, 0))]
    args = [x]
    if norm_weight is not None:
        in_specs.append(pl.BlockSpec((1, K), lambda i, j: (0, 0)))
        args.append(norm_weight.reshape(1, K))
    in_specs.append(pl.BlockSpec((K, tn), lambda i, j: (0, j)))
    args.append(w)
    if residual is not None:
        in_specs.append(pl.BlockSpec((tm, tn), lambda i, j: (i, j)))
        args.append(residual)

    kernel = _make_linear_kernel(norm_weight is not None, residual is not None, eps)
    return pl.pallas_call(
        kernel,
        out_shape=jax.ShapeDtypeStruct((M, N), out_dtype),
        grid=grid,
        in_specs=in_specs,
        out_specs=pl.BlockSpec((tm, tn), lambda i, j: (i, j)),
        compiler_params=pltpu.CompilerParams(
            dimension_semantics=("parallel", "parallel"),
            vmem_limit_bytes=_VMEM_LIMIT),
    )(*args)


def mlp(x, norm_weight, wg, wu, wd, *, eps, tm=256, ti=512):
    """out = x + GeGLU(rmsnorm(x)) with the post-attention norm fused in."""
    M, H = x.shape
    I = wg.shape[1]
    tm, ti = _tile(M, tm), _tile(I, ti)
    grid = (M // tm, I // ti)
    return pl.pallas_call(
        functools.partial(_mlp_kernel, eps=eps),
        out_shape=jax.ShapeDtypeStruct((M, H), x.dtype),
        grid=grid,
        in_specs=[
            pl.BlockSpec((tm, H), lambda i, j: (i, 0)),   # x (also the residual)
            pl.BlockSpec((1, H), lambda i, j: (0, 0)),    # post_ln weight
            pl.BlockSpec((H, ti), lambda i, j: (0, j)),   # w_gate
            pl.BlockSpec((H, ti), lambda i, j: (0, j)),   # w_up
            pl.BlockSpec((ti, H), lambda i, j: (j, 0)),   # w_down
        ],
        out_specs=pl.BlockSpec((tm, H), lambda i, j: (i, 0)),
        scratch_shapes=[pltpu.VMEM((tm, H), x.dtype),       # normed x (bf16)
                        pltpu.VMEM((tm, H), jnp.float32)],  # f32 down-proj acc
        compiler_params=pltpu.CompilerParams(
            dimension_semantics=("parallel", "arbitrary"),
            vmem_limit_bytes=_VMEM_LIMIT),
    )(x, norm_weight.reshape(1, H), wg, wu, wd)


def flash_attention(q, k, v, key_bias, *, tq=256, tkv=256):
    """q: [B,nH,S,D] (already scaled), k/v: [B,nKV,S,D],
    key_bias: [B,1,S] additive f32 padding bias.  GQA groups are processed in
    one kernel invocation so K/V tiles are fetched once per group."""
    B, nH, S, D = q.shape
    nKV = k.shape[1]
    n_rep = nH // nKV
    tq, tkv = _tile(S, tq), _tile(S, tkv)
    grid = (B, nKV, S // tq, S // tkv)

    q_spec = pl.BlockSpec((None, n_rep, tq, D), lambda b, g, qi, ki: (b, g, qi, 0))
    k_spec = pl.BlockSpec((None, None, tkv, D), lambda b, g, qi, ki: (b, g, ki, 0))
    v_spec = pl.BlockSpec((None, None, tkv, D), lambda b, g, qi, ki: (b, g, ki, 0))
    b_spec = pl.BlockSpec((None, 1, tkv), lambda b, g, qi, ki: (b, 0, ki))
    o_spec = pl.BlockSpec((None, n_rep, tq, D), lambda b, g, qi, ki: (b, g, qi, 0))

    return pl.pallas_call(
        _flash_attn_kernel,
        out_shape=jax.ShapeDtypeStruct((B, nH, S, D), q.dtype),
        grid=grid,
        in_specs=[q_spec, k_spec, v_spec, b_spec],
        out_specs=o_spec,
        scratch_shapes=[pltpu.VMEM((n_rep, tq, 1), jnp.float32),   # running max
                        pltpu.VMEM((n_rep, tq, 1), jnp.float32),   # running sum
                        pltpu.VMEM((n_rep, tq, D), jnp.float32)],  # output acc
        compiler_params=pltpu.CompilerParams(
            dimension_semantics=("parallel", "parallel", "parallel", "arbitrary"),
            vmem_limit_bytes=_VMEM_LIMIT),
    )(q, k, v, key_bias)


# ------------------------------- model glue ---------------------------------

def _rotate_half(x):
    d = x.shape[-1] // 2
    return jnp.concatenate([-x[..., d:], x[..., :d]], axis=-1)


def _apply_rope(x, cos, sin):
    # x: [B, heads, S, D] bf16; cos/sin: [B, S, D] f32 — apply in f32.
    xf = x.astype(jnp.float32)
    return (xf * cos[:, None] + _rotate_half(xf) * sin[:, None]).astype(x.dtype)


def init_params(key, cfg):
    H = cfg["hidden_size"]; I = cfg["intermediate_size"]
    nH = cfg["num_attention_heads"]; nKV = cfg["num_key_value_heads"]
    D = cfg["head_dim"]; V = cfg["vocab_size"]; L = cfg["num_hidden_layers"]

    def dense(k, fan_in, fan_out):
        # stored pre-transposed [in, out], bf16 for the MXU fast path
        return (0.02 * jax.random.normal(k, (fan_in, fan_out), jnp.float32)
                ).astype(jnp.bfloat16)

    keys = iter(jax.random.split(key, 5 * L + 2))
    params = {
        "embed": (0.02 * jax.random.normal(next(keys), (V, H), jnp.float32)
                  ).astype(jnp.bfloat16),
        "layers": [],
    }
    for _ in range(L):
        params["layers"].append(dict(
            input_ln=jnp.zeros((H,), jnp.float32),   # Gemma RMSNorm weight init 0
            post_ln=jnp.zeros((H,), jnp.float32),
            wqkv=dense(next(keys), H, (nH + 2 * nKV) * D),   # fused Q|K|V
            wo=dense(next(keys), nH * D, H),
            wg=dense(next(keys), H, I),
            wu=dense(next(keys), H, I),
            wd=dense(next(keys), I, H),
        ))
    params["final_ln"] = jnp.zeros((H,), jnp.float32)
    params["lm_head"] = dense(next(keys), H, V)
    return params


def gemma_forward(params, inputs_embeds, attention_mask, position_ids, cfg):
    # TODO(synk): KVCache autoregressive-decode path not implemented (kv_cache=None).
    B, S, H = inputs_embeds.shape
    nH = cfg["num_attention_heads"]; nKV = cfg["num_key_value_heads"]
    D = cfg["head_dim"]; eps = cfg["rms_norm_eps"]
    scale = 1.0 / math.sqrt(D)
    q_sz, kv_sz = nH * D, nKV * D

    # Gemma scales input embeddings by sqrt(hidden_size) in activation dtype.
    x = inputs_embeds * jnp.asarray(H ** 0.5, dtype=inputs_embeds.dtype)

    # additive padding bias [B,1,S] (f32; causal part is built in-kernel)
    key_bias = jnp.where(attention_mask.astype(bool), 0.0, _NEG_INF)
    key_bias = key_bias.astype(jnp.float32)[:, None, :]

    # RoPE tables [B, S, D] (f32); the 1/sqrt(D) attention scale is folded into
    # the q tables (RoPE is linear), so the attention kernel never rescales q.
    inv_freq = 1.0 / (cfg["rope_theta"] **
                      (jnp.arange(0, D, 2, dtype=jnp.float32) / D))
    freqs = position_ids.astype(jnp.float32)[..., None] * inv_freq[None, None, :]
    emb = jnp.concatenate([freqs, freqs], axis=-1)
    cos, sin = jnp.cos(emb), jnp.sin(emb)
    cos_q, sin_q = cos * scale, sin * scale

    x2d = x.reshape(B * S, H)
    for lp in params["layers"]:
        # --- self-attention block (input RMSNorm fused into the qkv matmul) ---
        residual = x2d
        qkv = linear(x2d, lp["wqkv"], norm_weight=lp["input_ln"], eps=eps)
        # TODO(synk): head split/transpose + RoPE kept as XLA glue (cheap elementwise).
        q = qkv[:, :q_sz].reshape(B, S, nH, D).transpose(0, 2, 1, 3)
        k = qkv[:, q_sz:q_sz + kv_sz].reshape(B, S, nKV, D).transpose(0, 2, 1, 3)
        v = qkv[:, q_sz + kv_sz:].reshape(B, S, nKV, D).transpose(0, 2, 1, 3)
        q = _apply_rope(q, cos_q, sin_q)                  # scale folded in here
        k = _apply_rope(k, cos, sin)
        attn = flash_attention(q, k, v, key_bias)         # GQA grouped in-kernel
        attn2d = attn.transpose(0, 2, 1, 3).reshape(B * S, nH * D)
        x2d = linear(attn2d, lp["wo"], residual=residual)  # fused residual add
        # --- MLP block (post RMSNorm + residual fused into the MLP kernel) ---
        x2d = mlp(x2d, lp["post_ln"], lp["wg"], lp["wu"], lp["wd"], eps=eps)

    # lm_head with the final RMSNorm fused in; f32 logits (reference: .float()).
    logits = linear(x2d, params["lm_head"], norm_weight=params["final_ln"],
                    eps=eps, out_dtype=jnp.float32)
    return {"logits": logits.reshape(B, S, -1)}


# ---------------------------------- main -------------------------------------

if __name__ == "__main__":
    cfg = CONFIG
    B, S = 2, 8
    key = jax.random.PRNGKey(0)
    kp, kt = jax.random.split(key)
    params = init_params(kp, cfg)

    # inputs_embeds come from the embedding table (gather is glue).
    token_ids = jax.random.randint(kt, (B, S), 0, cfg["vocab_size"])
    inputs_embeds = params["embed"][token_ids]                   # [B, S, H] bf16
    attention_mask = jnp.ones((B, S), jnp.int32)                 # [B, S]
    position_ids = jnp.broadcast_to(
        jnp.arange(S, dtype=jnp.int32)[None, :], (B, S))         # [B, S]

    fwd = jax.jit(functools.partial(gemma_forward, cfg=cfg))
    out = fwd(params, inputs_embeds, attention_mask, position_ids)
    logits = jax.block_until_ready(out["logits"])

    assert logits.shape == (B, S, cfg["vocab_size"]), logits.shape
    assert logits.dtype == jnp.float32
    assert bool(jnp.all(jnp.isfinite(logits)))
    print("KERNEL_OK")
</pallas_src>

<mosaic_0001>
module attributes {stable_mosaic.version = 11 : i64} {
  func.func @kernel(%arg0: i32, %arg1: i32, %arg2: memref<16x32xbf16, #tpu.memory_space<vmem>>, %arg3: memref<1x32xf32, #tpu.memory_space<vmem>>, %arg4: memref<32x64xbf16, #tpu.memory_space<vmem>>, %arg5: memref<16x64xbf16, #tpu.memory_space<vmem>>) attributes {dimension_semantics = [#tpu.dimension_semantics<parallel>, #tpu.dimension_semantics<parallel>], iteration_bounds = array<i64: 1, 1>, scalar_prefetch = 0 : i64, scratch_operands = 0 : i64, tpu.core_type = #tpu.core_type<tc>, window_params = [{transform_indices = @transform_0, window_bounds = array<i64: 16, 32>}, {pipeline_mode = #tpu.pipeline_mode<synchronous>, transform_indices = @transform_1, window_bounds = array<i64: 1, 32>}, {transform_indices = @transform_2, window_bounds = array<i64: 32, 64>}, {transform_indices = @transform_3, window_bounds = array<i64: 16, 64>}]} {
    %c0 = arith.constant 0 : index
    %c0_0 = arith.constant 0 : index
    %0 = vector.load %arg2[%c0, %c0_0] : memref<16x32xbf16, #tpu.memory_space<vmem>>, vector<16x32xbf16>
    %1 = arith.extf %0 : vector<16x32xbf16> to vector<16x32xf32>
    %2 = arith.mulf %1, %1 : vector<16x32xf32>
    %cst = arith.constant dense<0.000000e+00> : vector<16xf32>
    %3 = vector.multi_reduction <add>, %2, %cst [1] : vector<16x32xf32> to vector<16xf32>
    %4 = vector.shape_cast %3 : vector<16xf32> to vector<16x1xf32>
    %cst_1 = arith.constant 3.200000e+01 : f32
    %5 = vector.broadcast %cst_1 : f32 to vector<16x1xf32>
    %6 = arith.divf %4, %5 : vector<16x1xf32>
    %cst_2 = arith.constant 9.99999997E-7 : f32
    %7 = vector.broadcast %cst_2 : f32 to vector<16x1xf32>
    %8 = arith.addf %6, %7 : vector<16x1xf32>
    %9 = math.rsqrt %8 : vector<16x1xf32>
    %10 = vector.broadcast %9 : vector<16x1xf32> to vector<16x32xf32>
    %11 = arith.mulf %1, %10 : vector<16x32xf32>
    %c0_3 = arith.constant 0 : index
    %c0_4 = arith.constant 0 : index
    %12 = vector.load %arg3[%c0_3, %c0_4] : memref<1x32xf32, #tpu.memory_space<vmem>>, vector<1x32xf32>
    %cst_5 = arith.constant 1.000000e+00 : f32
    %13 = vector.broadcast %cst_5 : f32 to vector<1x32xf32>
    %14 = arith.addf %13, %12 : vector<1x32xf32>
    %15 = vector.broadcast %14 : vector<1x32xf32> to vector<16x32xf32>
    %16 = arith.mulf %11, %15 : vector<16x32xf32>
    %17 = arith.truncf %16 : vector<16x32xf32> to vector<16x32xbf16>
    %c0_6 = arith.constant 0 : index
    %c0_7 = arith.constant 0 : index
    %18 = vector.load %arg4[%c0_6, %c0_7] : memref<32x64xbf16, #tpu.memory_space<vmem>>, vector<32x64xbf16>
    %cst_8 = arith.constant dense<0.000000e+00> : vector<16x64xf32>
    %19 = tpu.matmul %17, %18, %cst_8 {dimension_numbers = #tpu.dot_dimension_numbers<[1], [0], [0], [1], [0, 0, 1, 1], [], []>} : vector<16x32xbf16>, vector<32x64xbf16>, vector<16x64xf32> -> vector<16x64xf32>
    %20 = arith.truncf %19 : vector<16x64xf32> to vector<16x64xbf16>
    %c0_9 = arith.constant 0 : index
    %c0_10 = arith.constant 0 : index
    %21 = vector.load %arg5[%c0_9, %c0_10] : memref<16x64xbf16, #tpu.memory_space<vmem>>, vector<16x64xbf16>
    tpu.vector_store %arg5[%c0_9, %c0_10], %20 {strides = array<i32>} : memref<16x64xbf16, #tpu.memory_space<vmem>>, vector<16x64xbf16>,
    return
  }
  func.func @transform_0(%arg0: i32, %arg1: i32) -> (i32, i32) {
    %c0_i32 = arith.constant 0 : i32
    %c0_i32_0 = arith.constant 0 : i32
    return %arg0, %c0_i32 : i32, i32
  }
  func.func @transform_1(%arg0: i32, %arg1: i32) -> (i32, i32) {
    %c0_i32 = arith.constant 0 : i32
    %c0_i32_0 = arith.constant 0 : i32
    %c0_i32_1 = arith.constant 0 : i32
    return %c0_i32, %c0_i32_0 : i32, i32
  }
  func.func @transform_2(%arg0: i32, %arg1: i32) -> (i32, i32) {
    %c0_i32 = arith.constant 0 : i32
    %c0_i32_0 = arith.constant 0 : i32
    return %c0_i32, %arg1 : i32, i32
  }
  func.func @transform_3(%arg0: i32, %arg1: i32) -> (i32, i32) {
    %c0_i32 = arith.constant 0 : i32
    return %arg0, %arg1 : i32, i32
  }
}

module attributes {stable_mosaic.version = 11 : i64} {
  func.func @_flash_attn_kernel(%arg0: i32, %arg1: i32, %arg2: i32, %arg3: i32, %arg4: memref<1x2x8x8xbf16, #tpu.memory_space<vmem>>, %arg5: memref<1x1x8x8xbf16, #tpu.memory_space<vmem>>, %arg6: memref<1x1x8x8xbf16, #tpu.memory_space<vmem>>, %arg7: memref<1x1x8xf32, #tpu.memory_space<vmem>>, %arg8: memref<1x2x8x8xbf16, #tpu.memory_space<vmem>>, %arg9: memref<2x8x1xf32, #tpu.memory_space<vmem>>, %arg10: memref<2x8x1xf32, #tpu.memory_space<vmem>>, %arg11: memref<2x8x8xf32, #tpu.memory_space<vmem>>) attributes {dimension_semantics = [#tpu.dimension_semantics<parallel>, #tpu.dimension_semantics<parallel>, #tpu.dimension_semantics<parallel>, #tpu.dimension_semantics<arbitrary>], iteration_bounds = array<i64: 2, 2, 1, 1>, scalar_prefetch = 0 : i64, scratch_operands = 3 : i64, tpu.core_type = #tpu.core_type<tc>, window_params = [{transform_indices = @transform_0, window_bounds = array<i64: 1, 2, 8, 8>}, {transform_indices = @transform_1, window_bounds = array<i64: 1, 1, 8, 8>}, {transform_indices = @transform_2, window_bounds = array<i64: 1, 1, 8, 8>}, {transform_indices = @transform_3, window_bounds = array<i64: 1, 1, 8>}, {transform_indices = @transform_4, window_bounds = array<i64: 1, 2, 8, 8>}]} {
    %c0_i32 = arith.constant 0 : i32
    %0 = arith.cmpi eq, %arg3, %c0_i32 : i32
    %1 = arith.extui %0 : i1 to i32
    %c0_i32_0 = arith.constant 0 : i32
    %2 = arith.cmpi ne, %1, %c0_i32_0 : i32
    scf.if %2 {
      %cst = arith.constant -1.000000e+30 : f32
      %12 = vector.broadcast %cst : f32 to vector<2x8x1xf32>
      %c0 = arith.constant 0 : index
      %c0_5 = arith.constant 0 : index
      %c0_6 = arith.constant 0 : index
      %13 = vector.load %arg9[%c0, %c0_5, %c0_6] : memref<2x8x1xf32, #tpu.memory_space<vmem>>, vector<2x8x1xf32>
      tpu.vector_store %arg9[%c0, %c0_5, %c0_6], %12 {strides = array<i32>} : memref<2x8x1xf32, #tpu.memory_space<vmem>>, vector<2x8x1xf32>,
      %cst_7 = arith.constant 0.000000e+00 : f32
      %14 = vector.broadcast %cst_7 : f32 to vector<2x8x1xf32>
      %c0_8 = arith.constant 0 : index
      %c0_9 = arith.constant 0 : index
      %c0_10 = arith.constant 0 : index
      %15 = vector.load %arg10[%c0_8, %c0_9, %c0_10] : memref<2x8x1xf32, #tpu.memory_space<vmem>>, vector<2x8x1xf32>
      tpu.vector_store %arg10[%c0_8, %c0_9, %c0_10], %14 {strides = array<i32>} : memref<2x8x1xf32, #tpu.memory_space<vmem>>, vector<2x8x1xf32>,
      %cst_11 = arith.constant 0.000000e+00 : f32
      %16 = vector.broadcast %cst_11 : f32 to vector<2x8x8xf32>
      %c0_12 = arith.constant 0 : index
      %c0_13 = arith.constant 0 : index
      %c0_14 = arith.constant 0 : index
      %17 = vector.load %arg11[%c0_12, %c0_13, %c0_14] : memref<2x8x8xf32, #tpu.memory_space<vmem>>, vector<2x8x8xf32>
      tpu.vector_store %arg11[%c0_12, %c0_13, %c0_14], %16 {strides = array<i32>} : memref<2x8x8xf32, #tpu.memory_space<vmem>>, vector<2x8x8xf32>,
    } else {
    }
    %c8_i32 = arith.constant 8 : i32
    %3 = arith.muli %arg3, %c8_i32 : i32
    %c8_i32_1 = arith.constant 8 : i32
    %4 = arith.muli %arg2, %c8_i32_1 : i32
    %c7_i32 = arith.constant 7 : i32
    %5 = arith.addi %4, %c7_i32 : i32
    %6 = arith.cmpi sle, %3, %5 : i32
    %7 = arith.extui %6 : i1 to i32
    %c0_i32_2 = arith.constant 0 : i32
    %8 = arith.cmpi ne, %7, %c0_i32_2 : i32
    scf.if %8 {
      %c0 = arith.constant 0 : index
      %c0_5 = arith.constant 0 : index
      %c0_6 = arith.constant 0 : index
      %c0_7 = arith.constant 0 : index
      %12 = vector.load %arg5[%c0, %c0_5, %c0_6, %c0_7] : memref<1x1x8x8xbf16, #tpu.memory_space<vmem>>, vector<1x1x8x8xbf16>
      %13 = vector.shape_cast %12 : vector<1x1x8x8xbf16> to vector<8x8xbf16>
      %c0_8 = arith.constant 0 : index
      %c0_9 = arith.constant 0 : index
      %c0_10 = arith.constant 0 : index
      %c0_11 = arith.constant 0 : index
      %14 = vector.load %arg6[%c0_8, %c0_9, %c0_10, %c0_11] : memref<1x1x8x8xbf16, #tpu.memory_space<vmem>>, vector<1x1x8x8xbf16>
      %15 = vector.shape_cast %14 : vector<1x1x8x8xbf16> to vector<8x8xbf16>
      %c0_12 = arith.constant 0 : index
      %c0_13 = arith.constant 0 : index
      %c0_14 = arith.constant 0 : index
      %16 = vector.load %arg7[%c0_12, %c0_13, %c0_14] : memref<1x1x8xf32, #tpu.memory_space<vmem>>, vector<1x1x8xf32>
      %17 = vector.shape_cast %16 : vector<1x1x8xf32> to vector<1x8xf32>
      %c8_i32_15 = arith.constant 8 : i32
      %18 = arith.muli %arg2, %c8_i32_15 : i32
      %19 = tpu.iota {dimensions = array<i32: 0>} : vector<8x8xi32>
      %20 = vector.broadcast %18 : i32 to vector<8x8xi32>
      %21 = arith.addi %20, %19 : vector<8x8xi32>
      %c8_i32_16 = arith.constant 8 : i32
      %22 = arith.muli %arg3, %c8_i32_16 : i32
      %23 = tpu.iota {dimensions = array<i32: 1>} : vector<8x8xi32>
      %24 = vector.broadcast %22 : i32 to vector<8x8xi32>
      %25 = arith.addi %24, %23 : vector<8x8xi32>
      %26 = arith.cmpi sge, %21, %25 : vector<8x8xi32>
      %c0_17 = arith.constant 0 : index
      %c0_18 = arith.constant 0 : index
      %c0_19 = arith.constant 0 : index
      %c0_20 = arith.constant 0 : index
      %27 = vector.load %arg4[%c0_17, %c0_18, %c0_19, %c0_20] : memref<1x2x8x8xbf16, #tpu.memory_space<vmem>>, vector<1x1x8x8xbf16>
      %28 = vector.shape_cast %27 : vector<1x1x8x8xbf16> to vector<8x8xbf16>
      %cst = arith.constant dense<0.000000e+00> : vector<8x8xf32>
      %29 = tpu.matmul %28, %13, %cst {dimension_numbers = #tpu.dot_dimension_numbers<[1], [1], [0], [0], [0, 0, 1, 0], [], []>} : vector<8x8xbf16>, vector<8x8xbf16>, vector<8x8xf32> -> vector<8x8xf32>
      %30 = vector.broadcast %17 : vector<1x8xf32> to vector<8x8xf32>
      %31 = arith.addf %29, %30 : vector<8x8xf32>
      %cst_21 = arith.constant -1.000000e+30 : f32
      %32 = vector.broadcast %cst_21 : f32 to vector<8x8xf32>
      %33 = arith.select %26, %31, %32 : vector<8x8xi1>, vector<8x8xf32>
      %c0_22 = arith.constant 0 : index
      %c0_23 = arith.constant 0 : index
      %c0_24 = arith.constant 0 : index
      %34 = vector.load %arg9[%c0_22, %c0_23, %c0_24] : memref<2x8x1xf32, #tpu.memory_space<vmem>>, vector<1x8x1xf32>
      %35 = vector.shape_cast %34 : vector<1x8x1xf32> to vector<8x1xf32>
      %cst_25 = arith.constant dense<0xFF800000> : vector<8xf32>
      %36 = vector.multi_reduction <maximumf>, %33, %cst_25 [1] : vector<8x8xf32> to vector<8xf32>
      %37 = vector.shape_cast %36 : vector<8xf32> to vector<8x1xf32>
      %38 = arith.maximumf %35, %37 : vector<8x1xf32>
      %39 = arith.subf %35, %38 : vector<8x1xf32>
      %40 = math.exp %39 : vector<8x1xf32>
      %41 = vector.broadcast %38 : vector<8x1xf32> to vector<8x8xf32>
      %42 = arith.subf %33, %41 : vector<8x8xf32>
      %43 = math.exp %42 : vector<8x8xf32>
      %cst_26 = arith.constant -5.000000e+29 : f32
      %44 = vector.broadcast %cst_26 : f32 to vector<8x8xf32>
      %45 = arith.cmpf ogt, %33, %44 : vector<8x8xf32>
      %cst_27 = arith.constant 0.000000e+00 : f32
      %46 = vector.broadcast %cst_27 : f32 to vector<8x8xf32>
      %47 = arith.select %45, %43, %46 : vector<8x8xi1>, vector<8x8xf32>
      %c0_28 = arith.constant 0 : index
      %c0_29 = arith.constant 0 : index
      %c0_30 = arith.constant 0 : index
      %48 = vector.load %arg10[%c0_28, %c0_29, %c0_30] : memref<2x8x1xf32, #tpu.memory_space<vmem>>, vector<1x8x1xf32>
      %49 = vector.shape_cast %48 : vector<1x8x1xf32> to vector<8x1xf32>
      %50 = arith.mulf %40, %49 : vector<8x1xf32>
      %cst_31 = arith.constant dense<0.000000e+00> : vector<8xf32>
      %51 = vector.multi_reduction <add>, %47, %cst_31 [1] : vector<8x8xf32> to vector<8xf32>
      %52 = vector.shape_cast %51 : vector<8xf32> to vector<8x1xf32>
      %53 = arith.addf %50, %52 : vector<8x1xf32>
      %c0_32 = arith.constant 0 : index
      %c0_33 = arith.constant 0 : index
      %c0_34 = arith.constant 0 : index
      %54 = vector.load %arg10[%c0_32, %c0_33, %c0_34] : memref<2x8x1xf32, #tpu.memory_space<vmem>>, vector<1x8x1xf32>
      %55 = vector.shape_cast %54 : vector<1x8x1xf32> to vector<8x1xf32>
      %56 = vector.shape_cast %53 : vector<8x1xf32> to vector<1x8x1xf32>
      tpu.vector_store %arg10[%c0_32, %c0_33, %c0_34], %56 {strides = array<i32>} : memref<2x8x1xf32, #tpu.memory_space<vmem>>, vector<1x8x1xf32>,
      %c0_35 = arith.constant 0 : index
      %c0_36 = arith.constant 0 : index
      %c0_37 = arith.constant 0 : index
      %57 = vector.load %arg11[%c0_35, %c0_36, %c0_37] : memref<2x8x8xf32, #tpu.memory_space<vmem>>, vector<1x8x8xf32>
      %58 = vector.shape_cast %57 : vector<1x8x8xf32> to vector<8x8xf32>
      %59 = vector.broadcast %40 : vector<8x1xf32> to vector<8x8xf32>
      %60 = arith.mulf %59, %58 : vector<8x8xf32>
      %61 = arith.truncf %47 : vector<8x8xf32> to vector<8x8xbf16>
      %cst_38 = arith.constant dense<0.000000e+00> : vector<8x8xf32>
      %62 = tpu.matmul %61, %15, %cst_38 {dimension_numbers = #tpu.dot_dimension_numbers<[1], [0], [0], [1], [0, 0, 1, 1], [], []>} : vector<8x8xbf16>, vector<8x8xbf16>, vector<8x8xf32> -> vector<8x8xf32>
      %63 = arith.addf %60, %62 : vector<8x8xf32>
      %c0_39 = arith.constant 0 : index
      %c0_40 = arith.constant 0 : index
      %c0_41 = arith.constant 0 : index
      %64 = vector.load %arg11[%c0_39, %c0_40, %c0_41] : memref<2x8x8xf32, #tpu.memory_space<vmem>>, vector<1x8x8xf32>
      %65 = vector.shape_cast %64 : vector<1x8x8xf32> to vector<8x8xf32>
      %66 = vector.shape_cast %63 : vector<8x8xf32> to vector<1x8x8xf32>
      tpu.vector_store %arg11[%c0_39, %c0_40, %c0_41], %66 {strides = array<i32>} : memref<2x8x8xf32, #tpu.memory_space<vmem>>, vector<1x8x8xf32>,
      %c0_42 = arith.constant 0 : index
      %c0_43 = arith.constant 0 : index
      %c0_44 = arith.constant 0 : index
      %67 = vector.load %arg9[%c0_42, %c0_43, %c0_44] : memref<2x8x1xf32, #tpu.memory_space<vmem>>, vector<1x8x1xf32>
      %68 = vector.shape_cast %67 : vector<1x8x1xf32> to vector<8x1xf32>
      %69 = vector.shape_cast %38 : vector<8x1xf32> to vector<1x8x1xf32>
      tpu.vector_store %arg9[%c0_42, %c0_43, %c0_44], %69 {strides = array<i32>} : memref<2x8x1xf32, #tpu.memory_space<vmem>>, vector<1x8x1xf32>,
      %c0_45 = arith.constant 0 : index
      %c1 = arith.constant 1 : index
      %c0_46 = arith.constant 0 : index
      %c0_47 = arith.constant 0 : index
      %70 = vector.load %arg4[%c0_45, %c1, %c0_46, %c0_47] : memref<1x2x8x8xbf16, #tpu.memory_space<vmem>>, vector<1x1x8x8xbf16>
      %71 = vector.shape_cast %70 : vector<1x1x8x8xbf16> to vector<8x8xbf16>
      %cst_48 = arith.constant dense<0.000000e+00> : vector<8x8xf32>
      %72 = tpu.matmul %71, %13, %cst_48 {dimension_numbers = #tpu.dot_dimension_numbers<[1], [1], [0], [0], [0, 0, 1, 0], [], []>} : vector<8x8xbf16>, vector<8x8xbf16>, vector<8x8xf32> -> vector<8x8xf32>
      %73 = vector.broadcast %17 : vector<1x8xf32> to vector<8x8xf32>
      %74 = arith.addf %72, %73 : vector<8x8xf32>
      %cst_49 = arith.constant -1.000000e+30 : f32
      %75 = vector.broadcast %cst_49 : f32 to vector<8x8xf32>
      %76 = arith.select %26, %74, %75 : vector<8x8xi1>, vector<8x8xf32>
      %c1_50 = arith.constant 1 : index
      %c0_51 = arith.constant 0 : index
      %c0_52 = arith.constant 0 : index
      %77 = vector.load %arg9[%c1_50, %c0_51, %c0_52] : memref<2x8x1xf32, #tpu.memory_space<vmem>>, vector<1x8x1xf32>
      %78 = vector.shape_cast %77 : vector<1x8x1xf32> to vector<8x1xf32>
      %cst_53 = arith.constant dense<0xFF800000> : vector<8xf32>
      %79 = vector.multi_reduction <maximumf>, %76, %cst_53 [1] : vector<8x8xf32> to vector<8xf32>
      %80 = vector.shape_cast %79 : vector<8xf32> to vector<8x1xf32>
      %81 = arith.maximumf %78, %80 : vector<8x1xf32>
      %82 = arith.subf %78, %81 : vector<8x1xf32>
      %83 = math.exp %82 : vector<8x1xf32>
      %84 = vector.broadcast %81 : vector<8x1xf32> to vector<8x8xf32>
      %85 = arith.subf %76, %84 : vector<8x8xf32>
      %86 = math.exp %85 : vector<8x8xf32>
      %cst_54 = arith.constant -5.000000e+29 : f32
      %87 = vector.broadcast %cst_54 : f32 to vector<8x8xf32>
      %88 = arith.cmpf ogt, %76, %87 : vector<8x8xf32>
      %cst_55 = arith.constant 0.000000e+00 : f32
      %89 = vector.broadcast %cst_55 : f32 to vector<8x8xf32>
      %90 = arith.select %88, %86, %89 : vector<8x8xi1>, vector<8x8xf32>
      %c1_56 = arith.constant 1 : index
      %c0_57 = arith.constant 0 : index
      %c0_58 = arith.constant 0 : index
      %91 = vector.load %arg10[%c1_56, %c0_57, %c0_58] : memref<2x8x1xf32, #tpu.memory_space<vmem>>, vector<1x8x1xf32>
      %92 = vector.shape_cast %91 : vector<1x8x1xf32> to vector<8x1xf32>
      %93 = arith.mulf %83, %92 : vector<8x1xf32>
      %cst_59 = arith.constant dense<0.000000e+00> : vector<8xf32>
      %94 = vector.multi_reduction <add>, %90, %cst_59 [1] : vector<8x8xf32> to vector<8xf32>
      %95 = vector.shape_cast %94 : vector<8xf32> to vector<8x1xf32>
      %96 = arith.addf %93, %95 : vector<8x1xf32>
      %c1_60 = arith.constant 1 : index
      %c0_61 = arith.constant 0 : index
      %c0_62 = arith.constant 0 : index
      %97 = vector.load %arg10[%c1_60, %c0_61, %c0_62] : memref<2x8x1xf32, #tpu.memory_space<vmem>>, vector<1x8x1xf32>
      %98 = vector.shape_cast %97 : vector<1x8x1xf32> to vector<8x1xf32>
      %99 = vector.shape_cast %96 : vector<8x1xf32> to vector<1x8x1xf32>
      tpu.vector_store %arg10[%c1_60, %c0_61, %c0_62], %99 {strides = array<i32>} : memref<2x8x1xf32, #tpu.memory_space<vmem>>, vector<1x8x1xf32>,
      %c1_63 = arith.constant 1 : index
      %c0_64 = arith.constant 0 : index
      %c0_65 = arith.constant 0 : index
      %100 = vector.load %arg11[%c1_63, %c0_64, %c0_65] : memref<2x8x8xf32, #tpu.memory_space<vmem>>, vector<1x8x8xf32>
      %101 = vector.shape_cast %100 : vector<1x8x8xf32> to vector<8x8xf32>
      %102 = vector.broadcast %83 : vector<8x1xf32> to vector<8x8xf32>
      %103 = arith.mulf %102, %101 : vector<8x8xf32>
      %104 = arith.truncf %90 : vector<8x8xf32> to vector<8x8xbf16>
      %cst_66 = arith.constant dense<0.000000e+00> : vector<8x8xf32>
      %105 = tpu.matmul %104, %15, %cst_66 {dimension_numbers = #tpu.dot_dimension_numbers<[1], [0], [0], [1], [0, 0, 1, 1], [], []>} : vector<8x8xbf16>, vector<8x8xbf16>, vector<8x8xf32> -> vector<8x8xf32>
      %106 = arith.addf %103, %105 : vector<8x8xf32>
      %c1_67 = arith.constant 1 : index
      %c0_68 = arith.constant 0 : index
      %c0_69 = arith.constant 0 : index
      %107 = vector.load %arg11[%c1_67, %c0_68, %c0_69] : memref<2x8x8xf32, #tpu.memory_space<vmem>>, vector<1x8x8xf32>
      %108 = vector.shape_cast %107 : vector<1x8x8xf32> to vector<8x8xf32>
      %109 = vector.shape_cast %106 : vector<8x8xf32> to vector<1x8x8xf32>
      tpu.vector_store %arg11[%c1_67, %c0_68, %c0_69], %109 {strides = array<i32>} : memref<2x8x8xf32, #tpu.memory_space<vmem>>, vector<1x8x8xf32>,
      %c1_70 = arith.constant 1 : index
      %c0_71 = arith.constant 0 : index
      %c0_72 = arith.constant 0 : index
      %110 = vector.load %arg9[%c1_70, %c0_71, %c0_72] : memref<2x8x1xf32, #tpu.memory_space<vmem>>, vector<1x8x1xf32>
      %111 = vector.shape_cast %110 : vector<1x8x1xf32> to vector<8x1xf32>
      %112 = vector.shape_cast %81 : vector<8x1xf32> to vector<1x8x1xf32>
      tpu.vector_store %arg9[%c1_70, %c0_71, %c0_72], %112 {strides = array<i32>} : memref<2x8x1xf32, #tpu.memory_space<vmem>>, vector<1x8x1xf32>,
    } else {
    }
    %c0_i32_3 = arith.constant 0 : i32
    %9 = arith.cmpi eq, %arg3, %c0_i32_3 : i32
    %10 = arith.extui %9 : i1 to i32
    %c0_i32_4 = arith.constant 0 : i32
    %11 = arith.cmpi ne, %10, %c0_i32_4 : i32
    scf.if %11 {
      %c0 = arith.constant 0 : index
      %c0_5 = arith.constant 0 : index
      %c0_6 = arith.constant 0 : index
      %12 = vector.load %arg10[%c0, %c0_5, %c0_6] : memref<2x8x1xf32, #tpu.memory_space<vmem>>, vector<2x8x1xf32>
      %cst = arith.constant 0.000000e+00 : f32
      %13 = vector.broadcast %cst : f32 to vector<2x8x1xf32>
      %14 = arith.cmpf oeq, %12, %13 : vector<2x8x1xf32>
      %cst_7 = arith.constant 1.000000e+00 : f32
      %15 = vector.broadcast %cst_7 : f32 to vector<2x8x1xf32>
      %16 = arith.select %14, %15, %12 : vector<2x8x1xi1>, vector<2x8x1xf32>
      %c0_8 = arith.constant 0 : index
      %c0_9 = arith.constant 0 : index
      %c0_10 = arith.constant 0 : index
      %17 = vector.load %arg11[%c0_8, %c0_9, %c0_10] : memref<2x8x8xf32, #tpu.memory_space<vmem>>, vector<2x8x8xf32>
      %18 = tpu.reciprocal %16 {approx = true} : vector<2x8x1xf32> -> vector<2x8x1xf32>
      %19 = vector.broadcast %18 : vector<2x8x1xf32> to vector<2x8x8xf32>
      %20 = arith.mulf %17, %19 : vector<2x8x8xf32>
      %21 = arith.truncf %20 : vector<2x8x8xf32> to vector<2x8x8xbf16>
      %c0_11 = arith.constant 0 : index
      %c0_12 = arith.constant 0 : index
      %c0_13 = arith.constant 0 : index
      %c0_14 = arith.constant 0 : index
      %22 = vector.load %arg8[%c0_11, %c0_12, %c0_13, %c0_14] : memref<1x2x8x8xbf16, #tpu.memory_space<vmem>>, vector<1x2x8x8xbf16>
      %23 = vector.shape_cast %22 : vector<1x2x8x8xbf16> to vector<2x8x8xbf16>
      %24 = vector.shape_cast %21 : vector<2x8x8xbf16> to vector<1x2x8x8xbf16>
      tpu.vector_store %arg8[%c0_11, %c0_12, %c0_13, %c0_14], %24 {strides = array<i32>} : memref<1x2x8x8xbf16, #tpu.memory_space<vmem>>, vector<1x2x8x8xbf16>,
    } else {
    }
    return
  }
  func.func @transform_0(%arg0: i32, %arg1: i32, %arg2: i32, %arg3: i32) -> (i32, i32, i32, i32) {
    %c0_i32 = arith.constant 0 : i32
    %c0_i32_0 = arith.constant 0 : i32
    return %arg0, %arg1, %arg2, %c0_i32 : i32, i32, i32, i32
  }
  func.func @transform_1(%arg0: i32, %arg1: i32, %arg2: i32, %arg3: i32) -> (i32, i32, i32, i32) {
    %c0_i32 = arith.constant 0 : i32
    %c0_i32_0 = arith.constant 0 : i32
    return %arg0, %arg1, %arg3, %c0_i32 : i32, i32, i32, i32
  }
  func.func @transform_2(%arg0: i32, %arg1: i32, %arg2: i32, %arg3: i32) -> (i32, i32, i32, i32) {
    %c0_i32 = arith.constant 0 : i32
    %c0_i32_0 = arith.constant 0 : i32
    return %arg0, %arg1, %arg3, %c0_i32 : i32, i32, i32, i32
  }
  func.func @transform_3(%arg0: i32, %arg1: i32, %arg2: i32, %arg3: i32) -> (i32, i32, i32) {
    %c0_i32 = arith.constant 0 : i32
    %c0_i32_0 = arith.constant 0 : i32
    return %arg0, %c0_i32, %arg3 : i32, i32, i32
  }
  func.func @transform_4(%arg0: i32, %arg1: i32, %arg2: i32, %arg3: i32) -> (i32, i32, i32, i32) {
    %c0_i32 = arith.constant 0 : i32
    %c0_i32_0 = arith.constant 0 : i32
    return %arg0, %arg1, %arg2, %c0_i32 : i32, i32, i32, i32
  }
}

module attributes {stable_mosaic.version = 11 : i64} {
  func.func @kernel(%arg0: i32, %arg1: i32, %arg2: memref<16x32xbf16, #tpu.memory_space<vmem>>, %arg3: memref<32x32xbf16, #tpu.memory_space<vmem>>, %arg4: memref<16x32xbf16, #tpu.memory_space<vmem>>, %arg5: memref<16x32xbf16, #tpu.memory_space<vmem>>) attributes {dimension_semantics = [#tpu.dimension_semantics<parallel>, #tpu.dimension_semantics<parallel>], iteration_bounds = array<i64: 1, 1>, scalar_prefetch = 0 : i64, scratch_operands = 0 : i64, tpu.core_type = #tpu.core_type<tc>, window_params = [{transform_indices = @transform_0, window_bounds = array<i64: 16, 32>}, {transform_indices = @transform_1, window_bounds = array<i64: 32, 32>}, {transform_indices = @transform_2, window_bounds = array<i64: 16, 32>}, {transform_indices = @transform_3, window_bounds = array<i64: 16, 32>}]} {
    %c0 = arith.constant 0 : index
    %c0_0 = arith.constant 0 : index
    %0 = vector.load %arg2[%c0, %c0_0] : memref<16x32xbf16, #tpu.memory_space<vmem>>, vector<16x32xbf16>
    %c0_1 = arith.constant 0 : index
    %c0_2 = arith.constant 0 : index
    %1 = vector.load %arg3[%c0_1, %c0_2] : memref<32x32xbf16, #tpu.memory_space<vmem>>, vector<32x32xbf16>
    %cst = arith.constant dense<0.000000e+00> : vector<16x32xf32>
    %2 = tpu.matmul %0, %1, %cst {dimension_numbers = #tpu.dot_dimension_numbers<[1], [0], [0], [1], [0, 0, 1, 1], [], []>} : vector<16x32xbf16>, vector<32x32xbf16>, vector<16x32xf32> -> vector<16x32xf32>
    %c0_3 = arith.constant 0 : index
    %c0_4 = arith.constant 0 : index
    %3 = vector.load %arg4[%c0_3, %c0_4] : memref<16x32xbf16, #tpu.memory_space<vmem>>, vector<16x32xbf16>
    %4 = arith.extf %3 : vector<16x32xbf16> to vector<16x32xf32>
    %5 = arith.addf %2, %4 : vector<16x32xf32>
    %6 = arith.truncf %5 : vector<16x32xf32> to vector<16x32xbf16>
    %c0_5 = arith.constant 0 : index
    %c0_6 = arith.constant 0 : index
    %7 = vector.load %arg5[%c0_5, %c0_6] : memref<16x32xbf16, #tpu.memory_space<vmem>>, vector<16x32xbf16>
    tpu.vector_store %arg5[%c0_5, %c0_6], %6 {strides = array<i32>} : memref<16x32xbf16, #tpu.memory_space<vmem>>, vector<16x32xbf16>,
    return
  }
  func.func @transform_0(%arg0: i32, %arg1: i32) -> (i32, i32) {
    %c0_i32 = arith.constant 0 : i32
    %c0_i32_0 = arith.constant 0 : i32
    return %arg0, %c0_i32 : i32, i32
  }
  func.func @transform_1(%arg0: i32, %arg1: i32) -> (i32, i32) {
    %c0_i32 = arith.constant 0 : i32
    %c0_i32_0 = arith.constant 0 : i32
    return %c0_i32, %arg1 : i32, i32
  }
  func.func @transform_2(%arg0: i32, %arg1: i32) -> (i32, i32) {
    %c0_i32 = arith.constant 0 : i32
    return %arg0, %arg1 : i32, i32
  }
  func.func @transform_3(%arg0: i32, %arg1: i32) -> (i32, i32) {
    %c0_i32 = arith.constant 0 : i32
    return %arg0, %arg1 : i32, i32
  }
}

module attributes {stable_mosaic.version = 11 : i64} {
  func.func @_mlp_kernel(%arg0: i32, %arg1: i32, %arg2: memref<16x32xbf16, #tpu.memory_space<vmem>>, %arg3: memref<1x32xf32, #tpu.memory_space<vmem>>, %arg4: memref<32x64xbf16, #tpu.memory_space<vmem>>, %arg5: memref<32x64xbf16, #tpu.memory_space<vmem>>, %arg6: memref<64x32xbf16, #tpu.memory_space<vmem>>, %arg7: memref<16x32xbf16, #tpu.memory_space<vmem>>, %arg8: memref<16x32xbf16, #tpu.memory_space<vmem>>, %arg9: memref<16x32xf32, #tpu.memory_space<vmem>>) attributes {dimension_semantics = [#tpu.dimension_semantics<parallel>, #tpu.dimension_semantics<arbitrary>], iteration_bounds = array<i64: 1, 1>, scalar_prefetch = 0 : i64, scratch_operands = 2 : i64, tpu.core_type = #tpu.core_type<tc>, window_params = [{transform_indices = @transform_0, window_bounds = array<i64: 16, 32>}, {pipeline_mode = #tpu.pipeline_mode<synchronous>, transform_indices = @transform_1, window_bounds = array<i64: 1, 32>}, {transform_indices = @transform_2, window_bounds = array<i64: 32, 64>}, {transform_indices = @transform_3, window_bounds = array<i64: 32, 64>}, {transform_indices = @transform_4, window_bounds = array<i64: 64, 32>}, {transform_indices = @transform_5, window_bounds = array<i64: 16, 32>}]} {
    %c0_i32 = arith.constant 0 : i32
    %0 = arith.cmpi eq, %arg1, %c0_i32 : i32
    %1 = arith.extui %0 : i1 to i32
    %c0_i32_0 = arith.constant 0 : i32
    %2 = arith.cmpi ne, %1, %c0_i32_0 : i32
    scf.if %2 {
      %c0_20 = arith.constant 0 : index
      %c0_21 = arith.constant 0 : index
      %31 = vector.load %arg2[%c0_20, %c0_21] : memref<16x32xbf16, #tpu.memory_space<vmem>>, vector<16x32xbf16>
      %32 = arith.extf %31 : vector<16x32xbf16> to vector<16x32xf32>
      %33 = arith.mulf %32, %32 : vector<16x32xf32>
      %cst_22 = arith.constant dense<0.000000e+00> : vector<16xf32>
      %34 = vector.multi_reduction <add>, %33, %cst_22 [1] : vector<16x32xf32> to vector<16xf32>
      %35 = vector.shape_cast %34 : vector<16xf32> to vector<16x1xf32>
      %cst_23 = arith.constant 3.200000e+01 : f32
      %36 = vector.broadcast %cst_23 : f32 to vector<16x1xf32>
      %37 = arith.divf %35, %36 : vector<16x1xf32>
      %cst_24 = arith.constant 9.99999997E-7 : f32
      %38 = vector.broadcast %cst_24 : f32 to vector<16x1xf32>
      %39 = arith.addf %37, %38 : vector<16x1xf32>
      %40 = math.rsqrt %39 : vector<16x1xf32>
      %41 = vector.broadcast %40 : vector<16x1xf32> to vector<16x32xf32>
      %42 = arith.mulf %32, %41 : vector<16x32xf32>
      %c0_25 = arith.constant 0 : index
      %c0_26 = arith.constant 0 : index
      %43 = vector.load %arg3[%c0_25, %c0_26] : memref<1x32xf32, #tpu.memory_space<vmem>>, vector<1x32xf32>
      %cst_27 = arith.constant 1.000000e+00 : f32
      %44 = vector.broadcast %cst_27 : f32 to vector<1x32xf32>
      %45 = arith.addf %44, %43 : vector<1x32xf32>
      %46 = vector.broadcast %45 : vector<1x32xf32> to vector<16x32xf32>
      %47 = arith.mulf %42, %46 : vector<16x32xf32>
      %48 = arith.truncf %47 : vector<16x32xf32> to vector<16x32xbf16>
      %c0_28 = arith.constant 0 : index
      %c0_29 = arith.constant 0 : index
      %49 = vector.load %arg8[%c0_28, %c0_29] : memref<16x32xbf16, #tpu.memory_space<vmem>>, vector<16x32xbf16>
      tpu.vector_store %arg8[%c0_28, %c0_29], %48 {strides = array<i32>} : memref<16x32xbf16, #tpu.memory_space<vmem>>, vector<16x32xbf16>,
      %cst_30 = arith.constant 0.000000e+00 : f32
      %50 = vector.broadcast %cst_30 : f32 to vector<16x32xf32>
      %c0_31 = arith.constant 0 : index
      %c0_32 = arith.constant 0 : index
      %51 = vector.load %arg9[%c0_31, %c0_32] : memref<16x32xf32, #tpu.memory_space<vmem>>, vector<16x32xf32>
      tpu.vector_store %arg9[%c0_31, %c0_32], %50 {strides = array<i32>} : memref<16x32xf32, #tpu.memory_space<vmem>>, vector<16x32xf32>,
    } else {
    }
    %c0 = arith.constant 0 : index
    %c0_1 = arith.constant 0 : index
    %3 = vector.load %arg8[%c0, %c0_1] : memref<16x32xbf16, #tpu.memory_space<vmem>>, vector<16x32xbf16>
    %c0_2 = arith.constant 0 : index
    %c0_3 = arith.constant 0 : index
    %4 = vector.load %arg4[%c0_2, %c0_3] : memref<32x64xbf16, #tpu.memory_space<vmem>>, vector<32x64xbf16>
    %cst = arith.constant dense<0.000000e+00> : vector<16x64xf32>
    %5 = tpu.matmul %3, %4, %cst {dimension_numbers = #tpu.dot_dimension_numbers<[1], [0], [0], [1], [0, 0, 1, 1], [], []>} : vector<16x32xbf16>, vector<32x64xbf16>, vector<16x64xf32> -> vector<16x64xf32>
    %c0_4 = arith.constant 0 : index
    %c0_5 = arith.constant 0 : index
    %6 = vector.load %arg5[%c0_4, %c0_5] : memref<32x64xbf16, #tpu.memory_space<vmem>>, vector<32x64xbf16>
    %cst_6 = arith.constant dense<0.000000e+00> : vector<16x64xf32>
    %7 = tpu.matmul %3, %6, %cst_6 {dimension_numbers = #tpu.dot_dimension_numbers<[1], [0], [0], [1], [0, 0, 1, 1], [], []>} : vector<16x32xbf16>, vector<32x64xbf16>, vector<16x64xf32> -> vector<16x64xf32>
    %cst_7 = arith.constant 5.000000e-01 : f32
    %8 = vector.broadcast %cst_7 : f32 to vector<16x64xf32>
    %9 = arith.mulf %8, %5 : vector<16x64xf32>
    %cst_8 = arith.constant 4.471500e-02 : f32
    %10 = vector.broadcast %cst_8 : f32 to vector<16x64xf32>
    %11 = arith.mulf %10, %5 : vector<16x64xf32>
    %12 = arith.mulf %11, %5 : vector<16x64xf32>
    %13 = arith.mulf %12, %5 : vector<16x64xf32>
    %14 = arith.addf %5, %13 : vector<16x64xf32>
    %cst_9 = arith.constant 0.797884583 : f32
    %15 = vector.broadcast %cst_9 : f32 to vector<16x64xf32>
    %16 = arith.mulf %15, %14 : vector<16x64xf32>
    %17 = math.tanh %16 : vector<16x64xf32>
    %cst_10 = arith.constant 1.000000e+00 : f32
    %18 = vector.broadcast %cst_10 : f32 to vector<16x64xf32>
    %19 = arith.addf %18, %17 : vector<16x64xf32>
    %20 = arith.mulf %9, %19 : vector<16x64xf32>
    %21 = arith.mulf %20, %7 : vector<16x64xf32>
    %22 = arith.truncf %21 : vector<16x64xf32> to vector<16x64xbf16>
    %c0_11 = arith.constant 0 : index
    %c0_12 = arith.constant 0 : index
    %23 = vector.load %arg9[%c0_11, %c0_12] : memref<16x32xf32, #tpu.memory_space<vmem>>, vector<16x32xf32>
    %c0_13 = arith.constant 0 : index
    %c0_14 = arith.constant 0 : index
    %24 = vector.load %arg6[%c0_13, %c0_14] : memref<64x32xbf16, #tpu.memory_space<vmem>>, vector<64x32xbf16>
    %cst_15 = arith.constant dense<0.000000e+00> : vector<16x32xf32>
    %25 = tpu.matmul %22, %24, %cst_15 {dimension_numbers = #tpu.dot_dimension_numbers<[1], [0], [0], [1], [0, 0, 1, 1], [], []>} : vector<16x64xbf16>, vector<64x32xbf16>, vector<16x32xf32> -> vector<16x32xf32>
    %26 = arith.addf %23, %25 : vector<16x32xf32>
    %c0_16 = arith.constant 0 : index
    %c0_17 = arith.constant 0 : index
    %27 = vector.load %arg9[%c0_16, %c0_17] : memref<16x32xf32, #tpu.memory_space<vmem>>, vector<16x32xf32>
    tpu.vector_store %arg9[%c0_16, %c0_17], %26 {strides = array<i32>} : memref<16x32xf32, #tpu.memory_space<vmem>>, vector<16x32xf32>,
    %c0_i32_18 = arith.constant 0 : i32
    %28 = arith.cmpi eq, %arg1, %c0_i32_18 : i32
    %29 = arith.extui %28 : i1 to i32
    %c0_i32_19 = arith.constant 0 : i32
    %30 = arith.cmpi ne, %29, %c0_i32_19 : i32
    scf.if %30 {
      %c0_20 = arith.constant 0 : index
      %c0_21 = arith.constant 0 : index
      %31 = vector.load %arg9[%c0_20, %c0_21] : memref<16x32xf32, #tpu.memory_space<vmem>>, vector<16x32xf32>
      %c0_22 = arith.constant 0 : index
      %c0_23 = arith.constant 0 : index
      %32 = vector.load %arg2[%c0_22, %c0_23] : memref<16x32xbf16, #tpu.memory_space<vmem>>, vector<16x32xbf16>
      %33 = arith.extf %32 : vector<16x32xbf16> to vector<16x32xf32>
      %34 = arith.addf %31, %33 : vector<16x32xf32>
      %35 = arith.truncf %34 : vector<16x32xf32> to vector<16x32xbf16>
      %c0_24 = arith.constant 0 : index
      %c0_25 = arith.constant 0 : index
      %36 = vector.load %arg7[%c0_24, %c0_25] : memref<16x32xbf16, #tpu.memory_space<vmem>>, vector<16x32xbf16>
      tpu.vector_store %arg7[%c0_24, %c0_25], %35 {strides = array<i32>} : memref<16x32xbf16, #tpu.memory_space<vmem>>, vector<16x32xbf16>,
    } else {
    }
    return
  }
  func.func @transform_0(%arg0: i32, %arg1: i32) -> (i32, i32) {
    %c0_i32 = arith.constant 0 : i32
    %c0_i32_0 = arith.constant 0 : i32
    return %arg0, %c0_i32 : i32, i32
  }
  func.func @transform_1(%arg0: i32, %arg1: i32) -> (i32, i32) {
    %c0_i32 = arith.constant 0 : i32
    %c0_i32_0 = arith.constant 0 : i32
    %c0_i32_1 = arith.constant 0 : i32
    return %c0_i32, %c0_i32_0 : i32, i32
  }
  func.func @transform_2(%arg0: i32, %arg1: i32) -> (i32, i32) {
    %c0_i32 = arith.constant 0 : i32
    %c0_i32_0 = arith.constant 0 : i32
    return %c0_i32, %arg1 : i32, i32
  }
  func.func @transform_3(%arg0: i32, %arg1: i32) -> (i32, i32) {
    %c0_i32 = arith.constant 0 : i32
    %c0_i32_0 = arith.constant 0 : i32
    return %c0_i32, %arg1 : i32, i32
  }
  func.func @transform_4(%arg0: i32, %arg1: i32) -> (i32, i32) {
    %c0_i32 = arith.constant 0 : i32
    %c0_i32_0 = arith.constant 0 : i32
    return %arg1, %c0_i32 : i32, i32
  }
  func.func @transform_5(%arg0: i32, %arg1: i32) -> (i32, i32) {
    %c0_i32 = arith.constant 0 : i32
    %c0_i32_0 = arith.constant 0 : i32
    return %arg0, %c0_i32 : i32, i32
  }
}

module attributes {stable_mosaic.version = 11 : i64} {
  func.func @kernel(%arg0: i32, %arg1: i32, %arg2: memref<16x32xbf16, #tpu.memory_space<vmem>>, %arg3: memref<1x32xf32, #tpu.memory_space<vmem>>, %arg4: memref<32x256xbf16, #tpu.memory_space<vmem>>, %arg5: memref<16x256xf32, #tpu.memory_space<vmem>>) attributes {dimension_semantics = [#tpu.dimension_semantics<parallel>, #tpu.dimension_semantics<parallel>], iteration_bounds = array<i64: 1, 1>, scalar_prefetch = 0 : i64, scratch_operands = 0 : i64, tpu.core_type = #tpu.core_type<tc>, window_params = [{transform_indices = @transform_0, window_bounds = array<i64: 16, 32>}, {pipeline_mode = #tpu.pipeline_mode<synchronous>, transform_indices = @transform_1, window_bounds = array<i64: 1, 32>}, {transform_indices = @transform_2, window_bounds = array<i64: 32, 256>}, {transform_indices = @transform_3, window_bounds = array<i64: 16, 256>}]} {
    %c0 = arith.constant 0 : index
    %c0_0 = arith.constant 0 : index
    %0 = vector.load %arg2[%c0, %c0_0] : memref<16x32xbf16, #tpu.memory_space<vmem>>, vector<16x32xbf16>
    %1 = arith.extf %0 : vector<16x32xbf16> to vector<16x32xf32>
    %2 = arith.mulf %1, %1 : vector<16x32xf32>
    %cst = arith.constant dense<0.000000e+00> : vector<16xf32>
    %3 = vector.multi_reduction <add>, %2, %cst [1] : vector<16x32xf32> to vector<16xf32>
    %4 = vector.shape_cast %3 : vector<16xf32> to vector<16x1xf32>
    %cst_1 = arith.constant 3.200000e+01 : f32
    %5 = vector.broadcast %cst_1 : f32 to vector<16x1xf32>
    %6 = arith.divf %4, %5 : vector<16x1xf32>
    %cst_2 = arith.constant 9.99999997E-7 : f32
    %7 = vector.broadcast %cst_2 : f32 to vector<16x1xf32>
    %8 = arith.addf %6, %7 : vector<16x1xf32>
    %9 = math.rsqrt %8 : vector<16x1xf32>
    %10 = vector.broadcast %9 : vector<16x1xf32> to vector<16x32xf32>
    %11 = arith.mulf %1, %10 : vector<16x32xf32>
    %c0_3 = arith.constant 0 : index
    %c0_4 = arith.constant 0 : index
    %12 = vector.load %arg3[%c0_3, %c0_4] : memref<1x32xf32, #tpu.memory_space<vmem>>, vector<1x32xf32>
    %cst_5 = arith.constant 1.000000e+00 : f32
    %13 = vector.broadcast %cst_5 : f32 to vector<1x32xf32>
    %14 = arith.addf %13, %12 : vector<1x32xf32>
    %15 = vector.broadcast %14 : vector<1x32xf32> to vector<16x32xf32>
    %16 = arith.mulf %11, %15 : vector<16x32xf32>
    %17 = arith.truncf %16 : vector<16x32xf32> to vector<16x32xbf16>
    %c0_6 = arith.constant 0 : index
    %c0_7 = arith.constant 0 : index
    %18 = vector.load %arg4[%c0_6, %c0_7] : memref<32x256xbf16, #tpu.memory_space<vmem>>, vector<32x256xbf16>
    %cst_8 = arith.constant dense<0.000000e+00> : vector<16x256xf32>
    %19 = tpu.matmul %17, %18, %cst_8 {dimension_numbers = #tpu.dot_dimension_numbers<[1], [0], [0], [1], [0, 0, 1, 1], [], []>} : vector<16x32xbf16>, vector<32x256xbf16>, vector<16x256xf32> -> vector<16x256xf32>
    %c0_9 = arith.constant 0 : index
    %c0_10 = arith.constant 0 : index
    %20 = vector.load %arg5[%c0_9, %c0_10] : memref<16x256xf32, #tpu.memory_space<vmem>>, vector<16x256xf32>
    tpu.vector_store %arg5[%c0_9, %c0_10], %19 {strides = array<i32>} : memref<16x256xf32, #tpu.memory_space<vmem>>, vector<16x256xf32>,
    return
  }
  func.func @transform_0(%arg0: i32, %arg1: i32) -> (i32, i32) {
    %c0_i32 = arith.constant 0 : i32
    %c0_i32_0 = arith.constant 0 : i32
    return %arg0, %c0_i32 : i32, i32
  }
  func.func @transform_1(%arg0: i32, %arg1: i32) -> (i32, i32) {
    %c0_i32 = arith.constant 0 : i32
    %c0_i32_0 = arith.constant 0 : i32
    %c0_i32_1 = arith.constant 0 : i32
    return %c0_i32, %c0_i32_0 : i32, i32
  }
  func.func @transform_2(%arg0: i32, %arg1: i32) -> (i32, i32) {
    %c0_i32 = arith.constant 0 : i32
    %c0_i32_0 = arith.constant 0 : i32
    return %c0_i32, %arg1 : i32, i32
  }
  func.func @transform_3(%arg0: i32, %arg1: i32) -> (i32, i32) {
    %c0_i32 = arith.constant 0 : i32
    return %arg0, %arg1 : i32, i32
  }
}

</mosaic_0001>

<bundles_post_ra>
// kernel: gemma_forward.9
= control target key start
LH: loop header
LB: loop body
LE: loop exit
PB: predicated region body
PF: predicated region fallthrough
CT: control target
= control target key end

     0   :  { %vm21_vm0 = vcmask 261120   ;;  %v153_v7 = vmov 0.0   ;;  %vm154_vm1 = vmmov 0   ;;  %v40_v15 = vlaneseq  ;;  %s196_s0 = inlined_call_operand.vmem [shape: bf16[16,32], index: 0, kind: input, shape index: {}]   ;;  %s197_s2 = inlined_call_operand.vmem [shape: bf16[32,64], index: 2, kind: input, shape index: {}]   ;;  %s198_s1 = inlined_call_operand.vmem [shape: f32[1,32], index: 1, kind: input, shape index: {}]   ;;  %s199_s3 = inlined_call_operand.vmem [shape: bf16[16,64], index: 3, kind: output, shape index: {}]  }
   0x1   :  { %v131_v0 = vld [vmem:[%s196_s0] sm:$0xff]   ;;  %137 = vmatprep.subr.bf16.mxu0 %v153_v7  ;;  %141 = vmatprep.mubr.msk.bf16.mxu0 %vm154_vm1, %v153_v7  ;;  %v148_v9 = vld [vmem:[%s197_s2 + $0x8] sm:$0xff]   ;;  %vm116_vm2 = vcmask 519168  }
   0x2   :  { %v132_v1 = vunpack.c.l.bf16 %v131_v0  ;;  %v133_v2 = vunpack.c.h.bf16 %v131_v0  ;;  %v147_v8 = vld [vmem:[%s197_s2] sm:$0xff]   ;;  %v41_v17 = vshrl.u32 %v40_v15, 7 }
   0x3   :  { %138 = vmatpush3.bf16.msra.mxu0 %v147_v8  ;;  %v37_v18 = vld [vmem:[%s198_s1] sm:$0x1] }
   0x4   :  { %v19_v3 = vmul.f32 %v132_v1, %v132_v1  ;;  %v20_v4 = vmul.f32 %v133_v2, %v133_v2  ;;  %139 = vmatprep.subr.bf16.mxu0 %v153_v7  ;;  %v38_v19 = vadd.f32 1.0, %v37_v18  ;;  %v42_v20 = vsub.s32 0, %v41_v17 }
   0x6   :  { %v22_v5 = vsel %vm21_vm0, %v19_v3, 0.0  ;;  %v25_v6 = vsel %vm21_vm0, %v20_v4, 0.0  ;;  %v43_v23 = vrot.slane %v38_v19, %v42_v20 }
   0x7   :  { %23 = vadd.xlane.f32.xlu0 %v22_v5  ;;  %140 = vmatpush3.bf16.msra.mxu0 %v148_v9 }
   0xb   :  { %26 = vadd.xlane.f32.xlu0 %v25_v6 }
  0x94   :  { %v24_v10 = vpop.xlane.xlu0 %23 }
  0x95   :  { %v29_v11 = vmul.f32 0.03125, %v24_v10 }
  0x97   :  { %v31_v12 = vadd.f32 1e-06, %v29_v11 }
  0x98   :  { %v27_v13 = vpop.xlane.xlu0 %26 }
  0x99   :  { %149 = vrsqrt.f32 %v31_v12  ;;  %v30_v14 = vmul.f32 0.03125, %v27_v13 }
  0x9b   :  { %v32_v16 = vadd.f32 1e-06, %v30_v14 }
  0x9d   :  { %151 = vrsqrt.f32 %v32_v16 }
  0xa3   :  { %v150_v21 = vpop.eup %149 }
  0xa4   :  { %v35_v22 = vmul.f32 %v150_v21, %v132_v1 }
  0xa6   :  { %v45_v26 = vmul.f32 %v43_v23, %v35_v22 }
  0xa7   :  { %v152_v24 = vpop.eup %151 }
  0xa8   :  { %v36_v25 = vmul.f32 %v152_v24, %v133_v2 }
  0xaa   :  { %v46_v27 = vmul.f32 %v43_v23, %v36_v25 }
  0xac   :  { %v47_v28 = vpack.c.bf16 %v46_v27, %v45_v26 }
  0xae   :  { %142 = vmatmul.mubr.msk.bf16.vlgmr.msra.gmra.mrb[0].mxu0 %vm21_vm0, %v47_v28 }
 0x181   :  { %v101_v29 = vpop.f32.mrb[0].mxu0 }
 0x182   :  { %v128_v30 = vpack.c.bf16 %v101_v29, %v101_v29  ;;  %v143_v31 = vpop.f32.mrb[1].mxu0 }
 0x183   :  { %v104_v32 = vpop.f32.mrb[2].mxu0 }
 0x184   :  { %117 = vst.msk [vmem:[%s199_s3] sm:$0xf] %vm116_vm2, %v128_v30  ;;  %v129_v33 = vpack.c.bf16 %v104_v32, %v104_v32  ;;  %v144_v34 = vpop.f32.mrb[3].mxu0 }
 0x186   :  { %118 = vst.msk [vmem:[%s199_s3 + $0x4] sm:$0xf] %vm116_vm2, %v129_v33 }

// kernel: gemma_forward.11
= control target key start
LH: loop header
LB: loop body
LE: loop exit
PB: predicated region body
PF: predicated region fallthrough
CT: control target
= control target key end

     0   :  { %v130_v0 = vmov 0.0   ;;  %vm131_vm0 = vmmov 0   ;;  %vm42_vm1 = vcmask 261120   ;;  %vm95_vm2 = vcmask 257024   ;;  %s170_s1 = inlined_call_operand.vmem [shape: bf16[32,32], index: 1, kind: input, shape index: {}]   ;;  %s171_s0 = inlined_call_operand.vmem [shape: bf16[16,32], index: 0, kind: input, shape index: {}]   ;;  %s172_s2 = inlined_call_operand.vmem [shape: bf16[16,32], index: 2, kind: input, shape index: {}]   ;;  %s173_s3 = inlined_call_operand.vmem [shape: bf16[16,32], index: 3, kind: output, shape index: {}]  }
   0x1   :  { %117 = vmatprep.subr.bf16.mxu0 %v130_v0  ;;  %v127_v1 = vld [vmem:[%s170_s1] sm:$0xff]   ;;  %121 = vmatprep.mubr.msk.bf16.mxu0 %vm131_vm0, %v130_v0  ;;  %v128_v2 = vld [vmem:[%s170_s1 + $0x8] sm:$0xff]  }
   0x2   :  { %118 = vmatpush3.bf16.msra.mxu0 %v127_v1  ;;  %v129_v3 = vld [vmem:[%s171_s0] sm:$0xff]  }
   0x3   :  { %119 = vmatprep.subr.bf16.mxu0 %v130_v0  ;;  %v111_v4 = vld [vmem:[%s172_s2] sm:$0xff]  }
   0x4   :  { %v112_v5 = vunpack.c.l.bf16 %v111_v4  ;;  %v113_v6 = vunpack.c.h.bf16 %v111_v4 }
   0x6   :  { %120 = vmatpush3.bf16.msra.mxu0 %v128_v2 }
   0x9   :  { %122 = vmatmul.mubr.msk.bf16.vlgmr.msra.gmra.mrb[0].mxu0 %vm42_vm1, %v129_v3 }
  0xdc   :  { %v80_v7 = vpop.f32.mrb[0].mxu0 }
  0xdd   :  { %v81_v8 = vadd.f32 %v112_v5, %v80_v7  ;;  %v123_v9 = vpop.f32.mrb[1].mxu0 }
  0xde   :  { %v83_v10 = vpop.f32.mrb[2].mxu0 }
  0xdf   :  { %v108_v11 = vpack.c.bf16 %v81_v8, %v81_v8  ;;  %v84_v12 = vadd.f32 %v113_v6, %v83_v10  ;;  %v124_v13 = vpop.f32.mrb[3].mxu0 }
  0xe1   :  { %96 = vst.msk [vmem:[%s173_s3] sm:$0xf] %vm95_vm2, %v108_v11  ;;  %v109_v14 = vpack.c.bf16 %v84_v12, %v84_v12 }
  0xe3   :  { %97 = vst.msk [vmem:[%s173_s3 + $0x4] sm:$0xf] %vm95_vm2, %v109_v14 }

// kernel: gemma_forward.10
= control target key start
LH: loop header
LB: loop body
LE: loop exit
PB: predicated region body
PF: predicated region fallthrough
CT: control target
= control target key end

     0   :  { %s1053_s15 = smov 0   ;;  %s1055_s16 = smov 0   ;;  %s1180_s0 = inlined_call_operand.vmem [shape: bf16[2,4,8,8], index: 0, kind: input, shape index: {}]   ;;  %s1181_s1 = inlined_call_operand.vmem [shape: bf16[2,2,8,8], index: 1, kind: input, shape index: {}]   ;;  %s1182_s2 = inlined_call_operand.vmem [shape: bf16[2,2,8,8], index: 2, kind: input, shape index: {}]   ;;  %s1183_s3 = inlined_call_operand.vmem [shape: f32[2,1,8], index: 3, kind: input, shape index: {}]   ;;  %s1184_s4 = inlined_call_operand.vmem [shape: bf16[2,4,8,8], index: 4, kind: output, shape index: {}]  }
   0x1   :  { %s1057_s17 = smov 0   ;;  %s1059_s18 = smov 0  }
   0x2   :  { %s1061_s19 = smov 0  }
   0x3 LB: > { %s36_s20 = sadd.s32 1, %s1014_s17  ;;  %s40_s21 = sadd.s32 1, %s1018_s18  ;;  %s1022_s19 = sphi %s1061_s19, %s14_s19   ;;  %s1018_s18 = sphi %s1059_s18, %s1188_s18   ;;  %s1014_s17 = sphi %s1057_s17, %s1187_s17   ;;  %s1010_s16 = sphi %s1055_s16, %s1186_s16   ;;  %s1006_s15 = sphi %s1053_s15, %s1185_s15  }
   0x4   : > { %p38_p0 = scmp.ge.s32.totalorder %s36_s20, 2  ;;  %p875_p1 = scmp.ge.s32.totalorder %s1022_s19, 1 }
   0x5   : > { %p257_p2 = scmp.lt.s32.totalorder %s1022_s19, 5 }
   0x6   : > { %s1190_s20 = smov (%p38_p0, %s36_s20), 0  ;;  %s1192_s21 = smov (!%p38_p0, %s40_s21), %s1018_s18 }
   0x7   : > { %p258_p3 = pnand %p875_p1, %p257_p2  ;;  %p42_p4 = scmp.ge.s32.totalorder %s1192_s21, 2 }
   0x8   : > { %p326_p5 = scmp.lt.s32.totalorder (!%p258_p3), %s1010_s16, 1  ;;  %p340_p6 = scmp.lt.s32.totalorder (!%p258_p3), %s1006_s15, 1  ;;  %vm389_vm0 = vcmask (!%p258_p3), 64512   ;;  %v1024_v0 = vmov (!%p258_p3), 0.0   ;;  %vm1025_vm1 = vmmov (!%p258_p3), 0   ;;  %vm384_vm2 = vcmask (!%p258_p3), 7168  }
   0x9   : > { %s1194_s21 = smov (%p42_p4, %s1192_s21), 0  ;;  %261 = sbr.rel (%p258_p3) target bundleno = 1347 (0x543), region = 36 }
   0xa   : > { %902 = vmatprep.subr.bf16.mxu0 (!%p258_p3), %v1024_v0  ;;  %390 = vst.msk [vmem:[#allocation4] sm:$0xff] (!%p258_p3), %vm389_vm0, %v1024_v0  ;;  %391 = vst.msk [vmem:[#allocation4 + $0x8] sm:$0xff] (!%p258_p3), %vm389_vm0, %v1024_v0  ;;  %904 = vmatprep.mubr.msk.bf16.mxu0 (!%p258_p3), %vm1025_vm1, %v1024_v0  ;;  %s876_s22 = sshll.u32 (!%p258_p3), %s1006_s15, 1  ;;  %v1026_v4 = vmov (!%p258_p3), -1e+30   ;;  %v402_v5 = vlaneseq (!%p258_p3)  ;;  %v1027_v16 = vmov (!%p258_p3), 0  }
   0xb   : > { %908 = vmatprep.subr.bf16.mxu1 (!%p258_p3), %v1024_v0  ;;  %910 = vmatprep.mubr.msk.bf16.mxu1 (!%p258_p3), %vm1025_vm1, %v1024_v0  ;;  %p328_p7 = scmp.lt.s32.totalorder (!%p258_p3), %s876_s22, 3  ;;  %385 = vst.msk [vmem:[#allocation2] sm:$0xff] (!%p258_p3), %vm384_vm2, %v1026_v4  ;;  %386 = vst.msk [vmem:[#allocation2 + $0x8] sm:$0xff] (!%p258_p3), %vm384_vm2, %v1026_v4  ;;  %vm503_vm4 = vcmask (!%p258_p3), 1043456   ;;  %vm705_vm9 = vcmask (!%p258_p3), 60416  }
   0xc   : > { %387 = vst.msk [vmem:[#allocation3] sm:$0xff] (!%p258_p3), %vm384_vm2, %v1024_v0  ;;  %388 = vst.msk [vmem:[#allocation3 + $0x8] sm:$0xff] (!%p258_p3), %vm384_vm2, %v1024_v0  ;;  %v403_v6 = vshrl.u32 (!%p258_p3), %v402_v5, 7  ;;  %v407_v7 = vand.u32 (!%p258_p3), 127, %v402_v5  ;;  %970 = vset.pattern.permute.xlu0 (!%p258_p3), %v1027_v16  ;;  %971 = vset.pattern.permute.xlu1 (!%p258_p3), %v1027_v16 }
   0xe   : > { %vm410_vm3 = vcmp.ge.s32.totalorder (!%p258_p3), %v403_v6, %v407_v7 }
  0x10   : > { %s1196_s16 = smov (!%p326_p5, %s1010_s16), 1  ;;  %s1198_s15 = smov (!%p340_p6, %s1006_s15), 1 }
  0x11   : > { %s879_s23 = sshll.u32 %s1196_s16, 1  ;;  %s877_s29 = sshll.u32 %s1196_s16, 2  ;;  %v492_v61 = vld [vmem:[#allocation4] sm:$0xff]  ;;  %v624_v16 = vld [vmem:[#allocation4 + $0x8] sm:$0xff] }
  0x12   : > { %s1101_s24 = sadd.s32 %s879_s23, %s1198_s15  ;;  %s1200_s22 = smov (!%p328_p7, %s876_s22), 3  ;;  %v466_v17 = vld [vmem:[#allocation2] sm:$0xff]  ;;  %v597_v41 = vld [vmem:[#allocation2 + $0x8] sm:$0xff] }
  0x13   : > { %s880_s25 = sshll.u32 %s1101_s24, 2  ;;  %s1111_s30 = sadd.s32 %s877_s29, %s1200_s22  ;;  %v484_v57 = vld [vmem:[#allocation3] sm:$0xff]  ;;  %v616_v4 = vld [vmem:[#allocation3 + $0x8] sm:$0xff] }
  0x14   : > { %s348_s28 = scalar_lea.vmem %s1181_s1, %s880_s25  ;;  %s878_s5 = sshll.u32 %s1111_s30, 2 }
  0x15   : > { %v399_v1 = vld [vmem:[%s348_s28] sm:$0xf]  ;;  %s1120_s8 = scalar_lea.vmem %s1180_s0, %s878_s5  ;;  %s365_s11 = scalar_lea.vmem %s1183_s3, %s1196_s16 }
  0x16   : > { %v423_v2 = vsel %vm389_vm0, %v399_v1, 0  ;;  %v411_v3 = vld [vmem:[%s1120_s8] sm:$0xf]  ;;  %s359_s14 = scalar_lea.vmem %s1182_s2, %s880_s25  ;;  %v889_v29 = vld [vmem:[%s1120_s8 + $0x4] sm:$0xf]  ;;  %s377_s22 = scalar_lea.vmem %s1184_s4, %s878_s5 }
  0x17   : > { %903 = vmatpush3.bf16.xpose.msra.mxu0 %v423_v2  ;;  %v886_v8 = vld [vmem:[%s365_s11] ss:$0 sm:$0xff] }
  0x18   : > { %920 = vmatprep.subr.bf16.mxu0 %v1024_v0  ;;  %v400_v21 = vld [vmem:[%s359_s14] sm:$0xf] }
  0x19   : > { %v505_v22 = vsel %vm503_vm4, %v400_v21, 0 }
  0x1a   : > { %909 = vmatpush3.bf16.msra.mxu1 %v505_v22 }
  0x1b   : > { %914 = vmatprep.subr.bf16.mxu1 %v1024_v0 }
  0x1e   : > { %905 = vmatmul.mubr.msk.bf16.vlgmr.msra.gmra.mrb[0].mxu0 %vm389_vm0, %v411_v3 }
  0x1f   : > { %922 = vmatprep.mubr.msk.bf16.mxu0 %vm1025_vm1, %v1024_v0  ;;  %921 = vmatpush3.bf16.msra.mxu0 %v505_v22 }
  0xf1   : > { %v459_v9 = vpop.f32.mrb[0].mxu0 }
  0xf2   : > { %v460_v10 = vadd.f32 %v886_v8, %v459_v9  ;;  %v906_v11 = vpop.f32.mrb[1].mxu0 }
  0xf3   : > { %v462_v12 = vpop.f32.mrb[2].mxu0 }
  0xf4   : > { %v907_v13 = vpop.f32.mrb[3].mxu0  ;;  %v465_v14 = vsel %vm410_vm3, %v460_v10, -1e+30 }
  0xf5   : > { %v467_v15 = vsel %vm389_vm0, %v465_v14, -inf  ;;  %vm482_vm5 = vcmp.gt.f32.partialorder %v465_v14, -5e+29 }
  0xf6   : > { %468 = vmax.xlane.f32.xlu0 %v467_v15 }
 0x183   : > { %v469_v18 = vpop.xlane.xlu0 %468 }
 0x184   : > { %v470_v19 = vmax.f32 %v466_v17, %v469_v18 }
 0x186   : > { %v471_v20 = vsub.f32 %v466_v17, %v470_v19  ;;  %549 = vst.msk [vmem:[#allocation2] sm:$0xff] %vm384_vm2, %v470_v19  ;;  %476 = vperm.xlu0 %970, %v470_v19  }
 0x188   : > { %v472_v45 = vmul.f32 1.442695, %v471_v20 }
 0x205   : > { %v477_v23 = vpop.permute.xlu0 %476 }
 0x206   : > { %v479_v24 = vsub.f32 %v465_v14, %v477_v23 }
 0x208   : > { %v480_v25 = vmul.f32 1.442695, %v479_v24 }
 0x20a   : > { %972 = vpow2.f32 %v480_v25 }
 0x20b   : > { %974 = vpow2.f32 %v472_v45 }
 0x214   : > { %v973_v26 = vpop.eup %972 }
 0x215   : > { %v483_v27 = vsel %vm482_vm5, %v973_v26, 0.0  ;;  %v975_v48 = vpop.eup %974 }
 0x216   : > { %v499_v28 = vpack.c.bf16 %v483_v27, %v483_v27  ;;  %v486_v44 = vsel %vm389_vm0, %v483_v27, 0.0  ;;  %v485_v58 = vmul.f32 %v975_v48, %v484_v57 }
 0x218   : > { %911 = vmatmul.mubr.msk.bf16.vlgmr.msra.gmra.mrb[0].mxu1 %vm389_vm0, %v499_v28 }
 0x219   : > { %915 = vmatpush3.bf16.xpose.msra.mxu1 %v423_v2  ;;  %916 = vmatprep.mubr.msk.bf16.mxu1 %vm1025_vm1, %v1024_v0 }
 0x220   : > { %917 = vmatmul.mubr.msk.bf16.vlgmr.msra.gmra.mrb[4].mxu1 %vm389_vm0, %v889_v29 }
 0x2eb   : > { %v541_v30 = vpop.f32.mrb[0].mxu1 }
 0x2ec   : > { %v912_v31 = vpop.f32.mrb[1].mxu1 }
 0x2ed   : > { %v544_v32 = vpop.f32.mrb[2].mxu1 }
 0x2ee   : > { %v913_v33 = vpop.f32.mrb[3].mxu1 }
 0x2f3   : > { %v589_v34 = vpop.f32.mrb[4].mxu1 }
 0x2f4   : > { %v590_v35 = vadd.f32 %v886_v8, %v589_v34  ;;  %v918_v36 = vpop.f32.mrb[5].mxu1 }
 0x2f5   : > { %v592_v37 = vpop.f32.mrb[6].mxu1 }
 0x2f6   : > { %v919_v38 = vpop.f32.mrb[7].mxu1  ;;  %v595_v39 = vsel %vm410_vm3, %v590_v35, -1e+30 }
 0x2f7   : > { %v598_v40 = vsel %vm389_vm0, %v595_v39, -inf  ;;  %vm613_vm6 = vcmp.gt.f32.partialorder %v595_v39, -5e+29 }
 0x2f8   : > { %599 = vmax.xlane.f32.xlu1 %v598_v40 }
 0x385   : > { %v600_v42 = vpop.xlane.xlu1 %599 }
 0x386   : > { %v601_v43 = vmax.f32 %v597_v41, %v600_v42 }
 0x388   : > { %677 = vst.msk [vmem:[#allocation2 + $0x8] sm:$0xff] %vm384_vm2, %v601_v43  ;;  %607 = vperm.xlu1 %971, %v601_v43   ;;  %v602_v46 = vsub.f32 %v597_v41, %v601_v43 }
 0x38a   : > { %v603_v47 = vmul.f32 1.442695, %v602_v46 }
 0x38c   : > { %976 = vpow2.f32 %v603_v47 }
 0x396   : > { %v977_v49 = vpop.eup %976 }
 0x397   : > { %v617_v5 = vmul.f32 %v977_v49, %v616_v4 }
 0x3ac   : > { %487 = vadd.xlane.f32.xlu1 %v486_v44 }
 0x3bd   : > { %495 = vperm.xlu1 %971, %v975_v48  }
 0x3c1   : > { %627 = vperm.xlu1 %971, %v977_v49  }
 0x407   : > { %v608_v50 = vpop.permute.xlu1 %607 }
 0x408   : > { %v610_v51 = vsub.f32 %v595_v39, %v608_v50 }
 0x40a   : > { %v611_v52 = vmul.f32 1.442695, %v610_v51 }
 0x40c   : > { %978 = vpow2.f32 %v611_v52 }
 0x416   : > { %v979_v53 = vpop.eup %978 }
 0x417   : > { %v614_v54 = vsel %vm613_vm6, %v979_v53, 0.0 }
 0x418   : > { %v618_v55 = vsel %vm389_vm0, %v614_v54, 0.0  ;;  %v631_v56 = vpack.c.bf16 %v614_v54, %v614_v54 }
 0x419   : > { %619 = vadd.xlane.f32.xlu0 %v618_v55 }
 0x41a   : > { %923 = vmatmul.mubr.msk.bf16.vlgmr.msra.gmra.mrb[4].mxu0 %vm389_vm0, %v631_v56 }
 0x439   : > { %v488_v59 = vpop.xlane.xlu1 %487 }
 0x43a   : > { %v489_v60 = vadd.f32 %v488_v59, %v485_v58 }
 0x43c   : > { %491 = vst.msk [vmem:[#allocation3] sm:$0xff] %vm384_vm2, %v489_v60 }
 0x43d   : > { %v496_v62 = vpop.permute.xlu1 %495 }
 0x43e   : > { %v498_v63 = vmul.f32 %v496_v62, %v492_v61 }
 0x440   : > { %v547_v0 = vadd.f32 %v541_v30, %v498_v63 }
 0x441   : > { %v628_v11 = vpop.permute.xlu1 %627 }
 0x442   : > { %548 = vst.msk [vmem:[#allocation4] sm:$0xff] %vm389_vm0, %v547_v0  ;;  %v630_v17 = vmul.f32 %v628_v11, %v624_v16 }
 0x443   : > { %v681_v1 = vld [vmem:[#allocation3] sm:$0xff] }
 0x444   : > { %vm683_vm7 = vcmp.eq.f32.partialorder %v681_v1, 0.0 }
 0x445   : > { %v685_v2 = vsel %vm683_vm7, 1.0, %v681_v1 }
 0x446   : > { %980 = vrcp.f32 %v685_v2 }
 0x449   : > { %v687_v12 = vld [vmem:[#allocation4] sm:$0xff] }
 0x450   : > { %v981_v3 = vpop.eup %980 }
 0x451   : > { %693 = vperm.xlu1 %971, %v981_v3  }
 0x4a6   : > { %v620_v6 = vpop.xlane.xlu0 %619 }
 0x4a7   : > { %v621_v7 = vadd.f32 %v620_v6, %v617_v5 }
 0x4a9   : > { %622 = vst.msk [vmem:[#allocation3 + $0x8] sm:$0xff] %vm384_vm2, %v621_v7 }
 0x4b0   : > { %v682_v8 = vld [vmem:[#allocation3 + $0x8] sm:$0xff] }
 0x4b1   : > { %vm684_vm8 = vcmp.eq.f32.partialorder %v682_v8, 0.0 }
 0x4b2   : > { %v686_v9 = vsel %vm684_vm8, 1.0, %v682_v8 }
 0x4b3   : > { %982 = vrcp.f32 %v686_v9 }
 0x4bd   : > { %v983_v10 = vpop.eup %982 }
 0x4be   : > { %698 = vperm.xlu0 %970, %v983_v10  }
 0x4d0   : > { %v694_v13 = vpop.permute.xlu1 %693 }
 0x4d1   : > { %v701_v14 = vmul.f32 %v694_v13, %v687_v12 }
 0x4d3   : > { %v703_v15 = vpack.c.bf16 %v701_v14, %v701_v14 }
 0x4d5   : > { %706 = vst.msk [vmem:[%s377_s22] sm:$0xf] %vm705_vm9, %v703_v15 }
 0x4ed   : > { %v669_v18 = vpop.f32.mrb[4].mxu0 }
 0x4ee   : > { %v675_v19 = vadd.f32 %v669_v18, %v630_v17  ;;  %v924_v20 = vpop.f32.mrb[5].mxu0 }
 0x4ef   : > { %v672_v21 = vpop.f32.mrb[6].mxu0 }
 0x4f0   : > { %676 = vst.msk [vmem:[#allocation4 + $0x8] sm:$0xff] %vm389_vm0, %v675_v19  ;;  %v925_v22 = vpop.f32.mrb[7].mxu0 }
 0x4f7   : > { %v688_v24 = vld [vmem:[#allocation4 + $0x8] sm:$0xff] }
 0x53d   : > { %v699_v23 = vpop.permute.xlu0 %698 }
 0x53e   : > { %v702_v25 = vmul.f32 %v699_v23, %v688_v24 }
 0x540   : > { %v704_v26 = vpack.c.bf16 %v702_v25, %v702_v25 }
 0x542   : > { %707 = vst.msk [vmem:[%s377_s22 + $0x4] sm:$0xf] %vm705_vm9, %v704_v26 }
 0x543 PF: > { %s14_s19 = sadd.s32 1, %s1022_s19   ;;  %s1185_s15 = smov %s1014_s17 }
 0x544   : > { %p11_p8 = scmp.ge.s32.totalorder %s14_s19, 6   ;;  %s1186_s16 = smov %s1018_s18 }
 0x545   : > { %s1187_s17 = smov %s1190_s20  ;;  %s1188_s18 = smov %s1194_s21 }
 0x546   :  { %13 = sbr.rel (!%p11_p8) target bundleno = 3 (0x3), region = 91 }

// kernel: gemma_forward.12
= control target key start
LH: loop header
LB: loop body
LE: loop exit
PB: predicated region body
PF: predicated region fallthrough
CT: control target
= control target key end

     0   :  { %vm31_vm0 = vcmask 261120   ;;  %v390_v8 = vmov 0.0   ;;  %vm391_vm1 = vmmov 0   ;;  %v50_v15 = vlaneseq  ;;  %s482_s0 = inlined_call_operand.vmem [shape: bf16[16,32], index: 0, kind: input, shape index: {}]   ;;  %s483_s2 = inlined_call_operand.vmem [shape: bf16[32,64], index: 2, kind: input, shape index: {}]   ;;  %s484_s3 = inlined_call_operand.vmem [shape: bf16[32,64], index: 3, kind: input, shape index: {}]   ;;  %s485_s1 = inlined_call_operand.vmem [shape: f32[1,32], index: 1, kind: input, shape index: {}]   ;;  %s486_s4 = inlined_call_operand.vmem [shape: bf16[64,32], index: 4, kind: input, shape index: {}]   ;;  %s487_s5 = inlined_call_operand.vmem [shape: bf16[16,32], index: 5, kind: output, shape index: {}]  }
   0x1   :  { %v326_v0 = vld [vmem:[%s482_s0] sm:$0xff]   ;;  %344 = vmatprep.subr.bf16.mxu1 %v390_v8  ;;  %59 = vst.msk [vmem:[#allocation3] sm:$0xff] %vm31_vm0, %v390_v8  ;;  %60 = vst.msk [vmem:[#allocation3 + $0x8] sm:$0xff] %vm31_vm0, %v390_v8  ;;  %360 = vmatprep.subr.bf16.mxu0 %v390_v8  ;;  %v375_v9 = vld [vmem:[%s483_s2 + $0x8] sm:$0xff]   ;;  %vm235_vm2 = vcmask 523264   ;;  %vm303_vm3 = vcmask 257024  }
   0x2   :  { %v425_v1 = vunpack.c.l.bf16 %v326_v0  ;;  %v427_v2 = vunpack.c.h.bf16 %v326_v0  ;;  %v374_v7 = vld [vmem:[%s483_s2] sm:$0xff]   ;;  %348 = vmatprep.mubr.msk.bf16.mxu1 %vm391_vm1, %v390_v8  ;;  %368 = vmatprep.mubr.msk.bf16.mxu0 %vm391_vm1, %v390_v8  ;;  %v51_v17 = vshrl.u32 %v50_v15, 7  ;;  %v377_v31 = vld [vmem:[%s484_s3 + $0x8] sm:$0xff]   ;;  %v380_v34 = vld [vmem:[%s486_s4 + $0x10] sm:$0xff]  }
   0x3   :  { %345 = vmatpush3.bf16.msra.mxu1 %v374_v7  ;;  %v47_v18 = vld [vmem:[%s485_s1] sm:$0x1]  ;;  %v379_v33 = vld [vmem:[%s486_s4 + $0x8] sm:$0xff]   ;;  %v381_v35 = vld [vmem:[%s486_s4 + $0x18] sm:$0xff]  }
   0x4   :  { %v29_v3 = vmul.f32 %v425_v1, %v425_v1  ;;  %v30_v4 = vmul.f32 %v427_v2, %v427_v2  ;;  %346 = vmatprep.subr.bf16.mxu1 %v390_v8  ;;  %v48_v19 = vadd.f32 1.0, %v47_v18  ;;  %v52_v20 = vsub.s32 0, %v51_v17  ;;  %v376_v29 = vld [vmem:[%s484_s3] sm:$0xff]  }
   0x5   :  { %v378_v32 = vld [vmem:[%s486_s4] sm:$0xff]  }
   0x6   :  { %v32_v5 = vsel %vm31_vm0, %v29_v3, 0.0  ;;  %v35_v6 = vsel %vm31_vm0, %v30_v4, 0.0  ;;  %v53_v22 = vrot.slane %v48_v19, %v52_v20  ;;  %361 = vmatpush3.bf16.msra.mxu0 %v378_v32 }
   0x7   :  { %33 = vadd.xlane.f32.xlu0 %v32_v5  ;;  %347 = vmatpush3.bf16.msra.mxu1 %v375_v9 }
   0x8   :  { %352 = vmatprep.subr.bf16.mxu1 %v390_v8  ;;  %362 = vmatprep.subr.bf16.mxu0 %v390_v8  ;;  %v201_v3 = vld [vmem:[#allocation3] sm:$0xff]  ;;  %v202_v5 = vld [vmem:[#allocation3 + $0x8] sm:$0xff] }
   0xa   :  { %363 = vmatpush3.bf16.msra.mxu0 %v379_v33 }
   0xb   :  { %36 = vadd.xlane.f32.xlu0 %v35_v6  ;;  %364 = vmatprep.subr.bf16.mxu0 %v390_v8 }
   0xe   :  { %365 = vmatpush3.bf16.msra.mxu0 %v380_v34 }
   0xf   :  { %366 = vmatprep.subr.bf16.mxu0 %v390_v8 }
  0x12   :  { %367 = vmatpush3.bf16.msra.mxu0 %v381_v35 }
  0x94   :  { %v34_v10 = vpop.xlane.xlu0 %33 }
  0x95   :  { %v39_v11 = vmul.f32 0.03125, %v34_v10 }
  0x97   :  { %v41_v12 = vadd.f32 1e-06, %v39_v11 }
  0x98   :  { %v37_v13 = vpop.xlane.xlu0 %36 }
  0x99   :  { %382 = vrsqrt.f32 %v41_v12  ;;  %v40_v14 = vmul.f32 0.03125, %v37_v13 }
  0x9b   :  { %v42_v16 = vadd.f32 1e-06, %v40_v14 }
  0x9d   :  { %384 = vrsqrt.f32 %v42_v16 }
  0xa3   :  { %v383_v21 = vpop.eup %382 }
  0xa4   :  { %v45_v23 = vmul.f32 %v383_v21, %v425_v1 }
  0xa6   :  { %v55_v26 = vmul.f32 %v53_v22, %v45_v23 }
  0xa7   :  { %v385_v24 = vpop.eup %384 }
  0xa8   :  { %v46_v25 = vmul.f32 %v385_v24, %v427_v2 }
  0xaa   :  { %v56_v27 = vmul.f32 %v53_v22, %v46_v25 }
  0xac   :  { %v57_v28 = vpack.c.bf16 %v56_v27, %v55_v26 }
  0xae   :  { %58 = vst.msk [vmem:[#allocation2] sm:$0xff] %vm31_vm0, %v57_v28 }
  0xb5   :  { %v61_v30 = vld [vmem:[#allocation2] sm:$0xff] }
  0xb6   :  { %349 = vmatmul.mubr.msk.bf16.vlgmr.msra.gmra.mrb[0].mxu1 %vm31_vm0, %v61_v30 }
  0xb7   :  { %353 = vmatpush3.bf16.msra.mxu1 %v376_v29  ;;  %356 = vmatprep.mubr.msk.bf16.mxu1 %vm391_vm1, %v390_v8 }
  0xb8   :  { %354 = vmatprep.subr.bf16.mxu1 %v390_v8 }
  0xbb   :  { %355 = vmatpush3.bf16.msra.mxu1 %v377_v31 }
  0xbe   :  { %357 = vmatmul.mubr.msk.bf16.vlgmr.msra.gmra.mrb[4].mxu1 %vm31_vm0, %v61_v30 }
 0x189   :  { %v116_v36 = vpop.f32.mrb[0].mxu1 }
 0x18a   :  { %v182_v37 = vmul.f32 0.044715, %v116_v36  ;;  %v350_v38 = vpop.f32.mrb[1].mxu1  ;;  %v180_v55 = vmul.f32 0.5, %v116_v36 }
 0x18b   :  { %v119_v39 = vpop.f32.mrb[2].mxu1 }
 0x18c   :  { %v184_v40 = vmul.f32 %v182_v37, %v116_v36  ;;  %v183_v41 = vmul.f32 0.044715, %v119_v39  ;;  %v351_v42 = vpop.f32.mrb[3].mxu1  ;;  %v181_v59 = vmul.f32 0.5, %v119_v39 }
 0x18e   :  { %v186_v43 = vmul.f32 %v184_v40, %v116_v36  ;;  %v185_v44 = vmul.f32 %v183_v41, %v119_v39 }
 0x190   :  { %v187_v45 = vmul.f32 %v185_v44, %v119_v39  ;;  %v188_v46 = vadd.f32 %v186_v43, %v116_v36 }
 0x191   :  { %v173_v47 = vpop.f32.mrb[4].mxu1 }
 0x192   :  { %v190_v48 = vmul.f32 0.7978846, %v188_v46  ;;  %v358_v49 = vpop.f32.mrb[5].mxu1  ;;  %v189_v50 = vadd.f32 %v187_v45, %v119_v39 }
 0x193   :  { %v176_v51 = vpop.f32.mrb[6].mxu1 }
 0x194   :  { %386 = vtanh.f32 %v190_v48  ;;  %v191_v52 = vmul.f32 0.7978846, %v189_v50  ;;  %v359_v53 = vpop.f32.mrb[7].mxu1 }
 0x196   :  { %388 = vtanh.f32 %v191_v52 }
 0x19e   :  { %v387_v54 = vpop.eup %386 }
 0x19f   :  { %v194_v56 = vadd.f32 1.0, %v387_v54 }
 0x1a0   :  { %v389_v57 = vpop.eup %388 }
 0x1a1   :  { %v196_v58 = vmul.f32 %v194_v56, %v180_v55  ;;  %v195_v60 = vadd.f32 1.0, %v389_v57 }
 0x1a3   :  { %v198_v61 = vmul.f32 %v196_v58, %v173_v47  ;;  %v197_v62 = vmul.f32 %v195_v60, %v181_v59 }
 0x1a5   :  { %v199_v63 = vmul.f32 %v197_v62, %v176_v51 }
 0x1a7   :  { %v200_v0 = vpack.c.bf16 %v199_v63, %v198_v61 }
 0x1a9   :  { %369 = vmatmul.mubr.msk.bf16.vlgmr.msra.gmra.mrb[0].mxu0 %vm235_vm2, %v200_v0 }
 0x27c   :  { %v273_v4 = vpop.f32.mrb[0].mxu0 }
 0x27d   :  { %v280_v6 = vadd.f32 %v273_v4, %v201_v3  ;;  %v370_v7 = vpop.f32.mrb[1].mxu0 }
 0x27e   :  { %v276_v8 = vpop.f32.mrb[2].mxu0 }
 0x27f   :  { %282 = vst.msk [vmem:[#allocation3] sm:$0xff] %vm31_vm0, %v280_v6  ;;  %v281_v9 = vadd.f32 %v276_v8, %v202_v5  ;;  %v371_v10 = vpop.f32.mrb[3].mxu0 }
 0x281   :  { %283 = vst.msk [vmem:[#allocation3 + $0x8] sm:$0xff] %vm31_vm0, %v281_v9 }
 0x286   :  { %v287_v11 = vld [vmem:[#allocation3] sm:$0xff] }
 0x287   :  { %v293_v12 = vadd.f32 %v425_v1, %v287_v11 }
 0x288   :  { %v288_v13 = vld [vmem:[#allocation3 + $0x8] sm:$0xff] }
 0x289   :  { %v323_v14 = vpack.c.bf16 %v293_v12, %v293_v12  ;;  %v294_v15 = vadd.f32 %v427_v2, %v288_v13 }
 0x28b   :  { %304 = vst.msk [vmem:[%s487_s5] sm:$0xf] %vm303_vm3, %v323_v14  ;;  %v324_v16 = vpack.c.bf16 %v294_v15, %v294_v15 }
 0x28d   :  { %305 = vst.msk [vmem:[%s487_s5 + $0x4] sm:$0xf] %vm303_vm3, %v324_v16 }

// kernel: gemma_forward.17
= control target key start
LH: loop header
LB: loop body
LE: loop exit
PB: predicated region body
PF: predicated region fallthrough
CT: control target
= control target key end

     0   :  { %s243_s0 = inlined_call_operand.vmem [shape: bf16[16,32], index: 0, kind: input, shape index: {}]   ;;  %s244_s1 = inlined_call_operand.vmem [shape: f32[1,32], index: 1, kind: input, shape index: {}]   ;;  %s245_s2 = inlined_call_operand.vmem [shape: bf16[32,256], index: 2, kind: input, shape index: {}]   ;;  %s246_s3 = inlined_call_operand.hbm [shape: f32[16,256], index: 3, kind: output, shape index: {}]  }
   0x1   :  { %v145_v0 = vld [vmem:[%s243_s0] sm:$0xff]  }
   0x2   :  { %v146_v1 = vunpack.c.l.bf16 %v145_v0  ;;  %v147_v2 = vunpack.c.h.bf16 %v145_v0 }
   0x3   :  { %8 = vsyncpa [#allocation3], 0  ;;  %vm22_vm0 = vcmask 261120   ;;  %v152_v7 = vld [vmem:[%s245_s2 + $0x4] ss:$8 sps:$4 sm:$0xff]   ;;  %v186_v10 = vmov 0   ;;  %v41_v17 = vlaneseq }
   0x4   :  { %v20_v3 = vmul.f32 %v146_v1, %v146_v1  ;;  %v21_v4 = vmul.f32 %v147_v2, %v147_v2  ;;  %v154_v8 = vld [vmem:[%s245_s2] ss:$8 sps:$4 sm:$0xff]   ;;  %v155_v9 = vld [vmem:[%s245_s2 + $0x14] ss:$8 sps:$4 sm:$0xff]   ;;  %76 = vmatprep.subr.bf16.mxu0 %v152_v7  ;;  %108 = vmatprep.mubr.bf16.mxu0 %v186_v10  ;;  %v157_v11 = vld [vmem:[%s245_s2 + $0x10] ss:$8 sps:$4 sm:$0xff]  }
   0x5   :  { %77 = vmatpush1.bf16.msra.mxu0 %v154_v8  ;;  %v42_v19 = vshrl.u32 %v41_v17, 7  ;;  %v38_v20 = vld [vmem:[%s244_s1] sm:$0x1]  ;;  %s187_s2 = smov [#allocation2]  }
   0x6   :  { %v23_v5 = vsel %vm22_vm0, %v20_v3, 0.0  ;;  %v26_v6 = vsel %vm22_vm0, %v21_v4, 0.0  ;;  %78 = vmatprep.subr.bf16.mxu0 %v155_v9  ;;  %v39_v21 = vadd.f32 1.0, %v38_v20  ;;  %s128_s23 = sshll.u32 %s187_s2, 4  ;;  %s129_s23 = int_to_ptr.vmem [resolvable:$true] %s128_s23 }
   0x7   :  { %24 = vadd.xlane.f32.xlu0 %v23_v5  ;;  %v43_v22 = vsub.s32 0, %v42_v19  ;;  %s162_s1 = scalar_lea.vmem %s129_s23, 512  ;;  %p167_p1 = scmp.lt.s32.totalorder %s129_s23, %s129_s23 }
   0x8   :  { %p163_p0 = scmp.ne.s32.totalorder %s129_s23, %s162_s1  ;;  %p168_p2 = scmp.lt.s32.totalorder %s162_s1, %s162_s1 }
   0x9   :  { %79 = vmatpush1.bf16.msra.mxu0 %v157_v11  ;;  %v44_v25 = vrot.slane %v39_v21, %v43_v22 }
   0xa   :  { %p169_p3 = por %p168_p2, %p167_p1 }
   0xb   :  { %27 = vadd.xlane.f32.xlu0 %v26_v6 }
   0xc   :  { %p170_p4 = pnand %p169_p3, %p163_p0 }
  0x94   :  { %v25_v12 = vpop.xlane.xlu0 %24 }
  0x95   :  { %v30_v13 = vmul.f32 0.03125, %v25_v12 }
  0x97   :  { %v32_v14 = vadd.f32 1e-06, %v30_v13 }
  0x98   :  { %v28_v15 = vpop.xlane.xlu0 %27 }
  0x99   :  { %158 = vrsqrt.f32 %v32_v14  ;;  %v31_v16 = vmul.f32 0.03125, %v28_v15 }
  0x9b   :  { %v33_v18 = vadd.f32 1e-06, %v31_v16 }
  0x9d   :  { %160 = vrsqrt.f32 %v33_v18 }
  0xa3   :  { %v159_v23 = vpop.eup %158 }
  0xa4   :  { %v36_v24 = vmul.f32 %v159_v23, %v146_v1 }
  0xa6   :  { %v46_v28 = vmul.f32 %v44_v25, %v36_v24 }
  0xa7   :  { %v161_v26 = vpop.eup %160 }
  0xa8   :  { %v37_v27 = vmul.f32 %v161_v26, %v147_v2 }
  0xaa   :  { %v47_v29 = vmul.f32 %v44_v25, %v37_v27 }
  0xac   :  { %v48_v30 = vpack.c.bf16 %v47_v29, %v46_v28 }
  0xae   :  { %143 = vmatmul.mubr.msk.bf16.vlgmr.msra.gmra.mrb[0].mxu0 %vm22_vm0, %v48_v30 }
 0x181   :  { %v110_v31 = vpop.f32.mrb[0].mxu0 }
 0x182   :  { %119 = vst [vmem:[#allocation2] sm:$0xff] %v110_v31  ;;  %v112_v32 = vpop.f32.mrb[1].mxu0 }
 0x183   :  { %120 = vst [vmem:[#allocation2 + $0x8] sm:$0xff] %v112_v32  ;;  %v114_v33 = vpop.f32.mrb[2].mxu0 }
 0x184   :  { %121 = vst [vmem:[#allocation2 + $0x10] sm:$0xff] %v114_v33  ;;  %v116_v34 = vpop.f32.mrb[3].mxu0 }
 0x185   :  { %122 = vst [vmem:[#allocation2 + $0x18] sm:$0xff] %v116_v34 }
 0x186   :  { %173 = shalt.err (!%p170_p4)
}
 0x187   :  { %s174_s26 = scalar_lea.hbm %s246_s3, 512 }
 0x188   :  { %p175_p5 = scmp.ne.s32.totalorder %s246_s3, %s174_s26  ;;  %p178_p6 = scmp.lt.u32.totalorder %s174_s26, %s246_s3 }
 0x18a   :  { %p180_p7 = pnand %p178_p6, %p175_p5 }
 0x18c   :  { %183 = shalt.err (!%p180_p7)
}
 0x18d   :  { %s188_s4 = smov 256   ;;  %s189_s5 = smov 16  }
 0x18e   :  { %134 = dma.vmem_to_hbm [thread:$0]  %s129_s23, 512, %s246_s3, [#allocation3], %s188_s4, %s188_s4, %s189_s5  }
 0x18f   :  { %184 = dma.done.wait [#allocation3], 512  }
 0x190   :  { %185 = vsyncadd [#allocation3], 4294966784 }
 0x191   :  { %138 = vsyncpa [#allocation3], 1 }

</bundles_post_ra>
